<compile_context>
chip_gen: v7x
topology: tpu7x:2x2x1
jax: 0.10.0
libtpu: 0.0.40
codegen_flags: <defaults>
</compile_context>

<pallas_src>
import math

import jax
import jax.numpy as jnp
from jax import lax
from jax.experimental import pallas as pl
from jax.experimental.pallas import tpu as pltpu


def _layernorm(x, w, b, eps=1e-5):
    mu = jnp.mean(x, axis=-1, keepdims=True)
    var = jnp.mean((x - mu) ** 2, axis=-1, keepdims=True)
    return (x - mu) * lax.rsqrt(var + eps) * w + b


def _make_kernel(num_layers, num_heads, d_model, seq_len, bt, latent_dim, n_pad):
    hd = d_model // num_heads
    scale = 1.0 / math.sqrt(hd)
    half = d_model // 2
    S, D, H, BT = seq_len, d_model, num_heads, bt
    bf16 = jnp.bfloat16

    def kernel(z_ref, cos_ref, sin_ref,
               fcw_ref, fcb_ref,
               dnw_ref, dnb_ref, h1w_ref, h1b_ref, h2w_ref, h2b_ref,
               inpw_ref, inpb_ref, outw_ref, outb_ref,
               n1w_ref, n1b_ref, n2w_ref, n2b_ref,
               ff1w_ref, ff1b_ref, ff2w_ref, ff2b_ref,
               out_ref,
               x_ref, attn_ref, mask_ref):
        l = pl.program_id(1)

        # ---- prologue (once per batch tile): mask + fc_latent + repeat + RoPE ----
        @pl.when(l == 0)
        def _():
            row = lax.broadcasted_iota(jnp.int32, (S, S), 0)
            col = lax.broadcasted_iota(jnp.int32, (S, S), 1)
            mask_ref[...] = jnp.where(col > row, jnp.float32(-1e30), jnp.float32(0.0))

            zt = z_ref[...].reshape(BT, latent_dim)                    # (BT, latent)
            x0 = jnp.dot(zt, fcw_ref[...],
                         preferred_element_type=jnp.float32) + fcb_ref[...]   # (BT, D)
            cos = cos_ref[...][None]                                   # (1, S, half)
            sin = sin_ref[...][None]
            x1 = x0[:, None, :half]                                    # (BT, 1, half)
            x2 = x0[:, None, half:]
            x_ref[...] = jnp.concatenate(
                [x1 * cos - x2 * sin, x1 * sin + x2 * cos], axis=-1)   # (BT, S, D)

        x = x_ref[...]                                                 # (BT, S, D) f32
        mask = mask_ref[...]                                           # (S, S)

        # ---- multi-head self-attention (single QKV matmul, per-head softmax,
        #      head merge via VMEM buffer + one K=D out-projection) ----
        qkv = (jnp.dot(x.reshape(BT * S, D).astype(bf16), inpw_ref[0],
                       preferred_element_type=jnp.float32)
               + inpb_ref[0]).reshape(BT, S, 3 * D)
        for h in range(H):
            qs = qkv[:, :, h * hd:(h + 1) * hd]
            ks = qkv[:, :, D + h * hd:D + (h + 1) * hd]
            vs = qkv[:, :, 2 * D + h * hd:2 * D + (h + 1) * hd]
            s = jnp.einsum('bqd,bkd->bqk', qs.astype(bf16), ks.astype(bf16),
                           preferred_element_type=jnp.float32) * scale + mask
            s = s - jnp.max(s, axis=-1, keepdims=True)
            p = jnp.exp(s)
            p = p * pl.reciprocal(jnp.sum(p, axis=-1, keepdims=True), approx=True)
            attn_ref[:, :, h * hd:(h + 1) * hd] = jnp.einsum(
                'bqk,bkd->bqd', p.astype(bf16), vs.astype(bf16),
                preferred_element_type=jnp.float32)
        attn = (jnp.dot(attn_ref[...].reshape(BT * S, D).astype(bf16), outw_ref[0],
                        preferred_element_type=jnp.float32)
                + outb_ref[0]).reshape(BT, S, D)
        x = _layernorm(x + attn, n1w_ref[0], n1b_ref[0])

        # ---- feed-forward ----
        hdn = jnp.maximum(
            jnp.dot(x.reshape(BT * S, D).astype(bf16), ff1w_ref[0],
                    preferred_element_type=jnp.float32) + ff1b_ref[0], 0.0)
        ff = (jnp.dot(hdn.astype(bf16), ff2w_ref[0],
                      preferred_element_type=jnp.float32)
              + ff2b_ref[0]).reshape(BT, S, D)
        x = _layernorm(x + ff, n2w_ref[0], n2b_ref[0])
        x_ref[...] = x

        # ---- epilogue: final norm + output head (lane-padded, dense stores) ----
        @pl.when(l == num_layers - 1)
        def _():
            xn = _layernorm(x, dnw_ref[...], dnb_ref[...])
            hh = jnp.maximum(
                jnp.dot(xn.reshape(BT * S, D).astype(bf16), h1w_ref[...],
                        preferred_element_type=jnp.float32) + h1b_ref[...], 0.0)
            y = jnp.tanh(jnp.dot(hh.astype(bf16), h2w_ref[...],
                                 preferred_element_type=jnp.float32) + h2b_ref[...])
            out_ref[...] = y.reshape(BT, S, n_pad).astype(out_ref.dtype)

    return kernel


def vpvae_decoder_forward(z, params, target_len, max_seq_len, num_heads,
                          batch_tile=None):
    B, latent_dim = z.shape
    d_model = params["fc_w"].shape[1]
    num_layers = params["inp_w"].shape[0]
    d_ff = params["ff1_w"].shape[2]
    n_feat = params["h2_w"].shape[1]
    S = min(target_len, max_seq_len)
    half = d_model // 2
    n_pad = ((n_feat + 127) // 128) * 128          # lane-dense output head
    assert d_model % 2 == 0 and d_model % num_heads == 0

    # Batch tile: amortize streamed layer-weight DMA over `bt` sequences while
    # keeping >= 2 batch tiles so both TensorCores are usable on v7x megacore.
    if batch_tile is None:
        bt = 1 if B <= 1 else min(8, max(1, (B + 1) // 2))
    else:
        bt = max(1, min(int(batch_tile), B))
    nbt = -(-B // bt)
    B_pad = nbt * bt

    # Host-precomputed RoPE tables (identical formula to apply_rope).
    freq = jnp.arange(half, dtype=jnp.float32)
    inv_freq = 1.0 / 10000 ** (freq / half)
    pos = jnp.arange(S, dtype=jnp.float32)
    ang = pos[:, None] * inv_freq[None, :]
    cos, sin = jnp.cos(ang), jnp.sin(ang)

    bf16 = jnp.bfloat16
    # Zero-pad the last projection so the output store is lane-dense; cast all
    # MXU weight operands to bf16 host-side (biases / LN params stay f32).
    h2_w_p = jnp.zeros((d_model, n_pad), jnp.float32).at[:, :n_feat].set(params["h2_w"])
    h2_b_p = jnp.zeros((1, n_pad), jnp.float32).at[:, :n_feat].set(params["h2_b"])

    weights_const = [params["fc_w"], params["fc_b"],
                     params["dn_w"], params["dn_b"],
                     params["h1_w"].astype(bf16), params["h1_b"],
                     h2_w_p.astype(bf16), h2_b_p]
    weights_layer = [params["inp_w"].astype(bf16), params["inp_b"],
                     params["out_w"].astype(bf16), params["out_b"],
                     params["n1_w"], params["n1_b"],
                     params["n2_w"], params["n2_b"],
                     params["ff1_w"].astype(bf16), params["ff1_b"],
                     params["ff2_w"].astype(bf16), params["ff2_b"]]

    z3 = z.reshape(B, 1, latent_dim)
    if B_pad != B:
        z3 = jnp.concatenate(
            [z3, jnp.zeros((B_pad - B, 1, latent_dim), z.dtype)], axis=0)

    kernel = _make_kernel(num_layers, num_heads, d_model, S, bt, latent_dim, n_pad)

    def const_spec(arr):
        r = arr.ndim
        return pl.BlockSpec(arr.shape, lambda b, l, _r=r: (0,) * _r)

    def layer_spec(arr):
        return pl.BlockSpec((1,) + tuple(arr.shape[1:]), lambda b, l: (l, 0, 0))

    in_specs = ([pl.BlockSpec((bt, 1, latent_dim), lambda b, l: (b, 0, 0)),
                 const_spec(cos), const_spec(sin)]
                + [const_spec(w) for w in weights_const]
                + [layer_spec(w) for w in weights_layer])
    out_spec = pl.BlockSpec((bt, S, n_pad), lambda b, l: (b, 0, 0))

    # VMEM budget from the actual in-flight buffers: double-buffered bf16 layer
    # weights, resident consts, batch-tile I/O, persistent scratch, temporaries.
    f4, f2 = 4, 2
    layer_bytes = ((d_model * 3 * d_model + d_model * d_model
                    + 2 * d_model * d_ff) * f2
                   + (3 * d_model + d_model + 4 * d_model + d_ff + d_model) * f4)
    const_bytes = ((latent_dim * d_model + d_model + 2 * S * half
                    + 2 * d_model + d_model + n_pad) * f4
                   + (d_model * d_model + d_model * n_pad) * f2)
    io_bytes = (bt * latent_dim + bt * S * n_pad) * f4
    scratch_bytes = (2 * bt * S * d_model + S * S) * f4
    temp_bytes = (bt * S * (3 * d_model + 4 * d_model + d_ff + n_pad)
                  + 2 * bt * S * S) * f4
    need = 2 * layer_bytes + 2 * const_bytes + 2 * io_bytes + scratch_bytes + temp_bytes
    try:
        cap = int(pltpu.get_tpu_info().vmem_capacity_bytes)
    except Exception:
        cap = 64 << 20
    vmem_bytes = int(min(max(2 * need, 32 << 20), cap - (8 << 20)))

    out = pl.pallas_call(
        kernel,
        out_shape=jax.ShapeDtypeStruct((B_pad, S, n_pad), jnp.float32),
        grid_spec=pltpu.PrefetchScalarGridSpec(
            num_scalar_prefetch=0,
            grid=(nbt, num_layers),
            in_specs=in_specs,
            out_specs=out_spec,
            scratch_shapes=[pltpu.VMEM((bt, S, d_model), jnp.float32),   # activations
                            pltpu.VMEM((bt, S, d_model), jnp.float32),   # head-merge buf
                            pltpu.VMEM((S, S), jnp.float32)],            # causal mask bias
        ),
        compiler_params=pltpu.CompilerParams(
            dimension_semantics=("parallel", "arbitrary"),
            vmem_limit_bytes=vmem_bytes,
        ),
    )(z3, cos, sin, *weights_const, *weights_layer)

    return out[:B, :, :n_feat]


def init_params(key, num_features, latent_dim, d_model, num_layers):
    d_ff = 4 * d_model
    keys = list(jax.random.split(key, 16))
    it = iter(keys)

    def w(shape, scale=0.05):
        return jax.random.normal(next(it), shape, jnp.float32) * scale

    return {
        # fc_latent: Linear(latent_dim, d_model); stored as (in, out)
        "fc_w": w((latent_dim, d_model)),
        "fc_b": w((1, d_model)),
        # per-layer MHA in_proj (3*d_model, d_model) stored transposed
        "inp_w": w((num_layers, d_model, 3 * d_model)),
        "inp_b": w((num_layers, 1, 3 * d_model)),
        "out_w": w((num_layers, d_model, d_model)),
        "out_b": w((num_layers, 1, d_model)),
        # LayerNorms (PyTorch init: weight=1, bias=0)
        "n1_w": jnp.ones((num_layers, 1, d_model), jnp.float32),
        "n1_b": jnp.zeros((num_layers, 1, d_model), jnp.float32),
        "n2_w": jnp.ones((num_layers, 1, d_model), jnp.float32),
        "n2_b": jnp.zeros((num_layers, 1, d_model), jnp.float32),
        # feed-forward
        "ff1_w": w((num_layers, d_model, d_ff)),
        "ff1_b": w((num_layers, 1, d_ff)),
        "ff2_w": w((num_layers, d_ff, d_model)),
        "ff2_b": w((num_layers, 1, d_model)),
        # decoder_norm
        "dn_w": jnp.ones((1, d_model), jnp.float32),
        "dn_b": jnp.zeros((1, d_model), jnp.float32),
        # output_head_continuous
        "h1_w": w((d_model, d_model)),
        "h1_b": w((1, d_model)),
        "h2_w": w((d_model, num_features)),
        "h2_b": w((1, num_features)),
    }


def reference_forward(z, params, target_len, max_seq_len, num_heads):
    """Pure-JAX reference mirroring the PyTorch module (dropout = identity)."""
    HP = jax.lax.Precision.HIGHEST
    B, _ = z.shape
    d_model = params["fc_w"].shape[1]
    L = params["inp_w"].shape[0]
    S = min(target_len, max_seq_len)
    x = jnp.einsum("bl,ld->bd", z, params["fc_w"], precision=HP) + params["fc_b"][0]
    x = jnp.broadcast_to(x[:, None, :], (B, S, d_model))

    half = d_model // 2
    freq = jnp.arange(half, dtype=jnp.float32)
    inv_freq = 1.0 / 10000 ** (freq / half)
    pos = jnp.arange(S, dtype=jnp.float32)
    ang = pos[:, None] * inv_freq[None, :]
    sin, cos = jnp.sin(ang), jnp.cos(ang)
    x1, x2 = x[..., :half], x[..., half:]
    x = jnp.concatenate([x1 * cos - x2 * sin, x1 * sin + x2 * cos], axis=-1)

    mask = jnp.triu(jnp.ones((S, S), bool), k=1)
    hd = d_model // num_heads
    scale = 1.0 / math.sqrt(hd)

    def ln(v, w, b, eps=1e-5):
        mu = v.mean(-1, keepdims=True)
        var = ((v - mu) ** 2).mean(-1, keepdims=True)
        return (v - mu) / jnp.sqrt(var + eps) * w + b

    for l in range(L):
        qkv = jnp.einsum("bsd,de->bse", x, params["inp_w"][l], precision=HP) + params["inp_b"][l]
        q, k, v = (qkv[..., :d_model], qkv[..., d_model:2 * d_model], qkv[..., 2 * d_model:])
        q = q.reshape(B, S, num_heads, hd).transpose(0, 2, 1, 3)
        k = k.reshape(B, S, num_heads, hd).transpose(0, 2, 1, 3)
        v = v.reshape(B, S, num_heads, hd).transpose(0, 2, 1, 3)
        s = jnp.einsum("bhqd,bhkd->bhqk", q, k, precision=HP) * scale
        s = jnp.where(mask, -jnp.inf, s)
        p = jax.nn.softmax(s, axis=-1)
        a = jnp.einsum("bhqk,bhkd->bhqd", p, v, precision=HP)
        a = a.transpose(0, 2, 1, 3).reshape(B, S, d_model)
        a = jnp.einsum("bsd,de->bse", a, params["out_w"][l], precision=HP) + params["out_b"][l]
        x = ln(x + a, params["n1_w"][l], params["n1_b"][l])
        h = jax.nn.relu(jnp.einsum("bsd,de->bse", x, params["ff1_w"][l], precision=HP)
                        + params["ff1_b"][l])
        f = jnp.einsum("bse,ed->bsd", h, params["ff2_w"][l], precision=HP) + params["ff2_b"][l]
        x = ln(x + f, params["n2_w"][l], params["n2_b"][l])

    x = ln(x, params["dn_w"], params["dn_b"])
    h = jax.nn.relu(jnp.einsum("bsd,de->bse", x, params["h1_w"], precision=HP) + params["h1_b"])
    y = jnp.tanh(jnp.einsum("bse,ef->bsf", h, params["h2_w"], precision=HP) + params["h2_b"])
    return y


if __name__ == "__main__":
    # Small, module-consistent shapes (B=4 exercises batch tiling: bt=2, 2 tiles).
    B = 4
    latent_dim = 8
    d_model = 32
    num_layers = 2
    num_heads = 4
    max_seq_len = 16
    target_len = 8
    num_features = 6   # num_total_svg_features_to_reconstruct

    key = jax.random.PRNGKey(0)
    kz, kp = jax.random.split(key)
    z = jax.random.normal(kz, (B, latent_dim), jnp.float32)
    params = init_params(kp, num_features, latent_dim, d_model, num_layers)

    out = vpvae_decoder_forward(z, params, target_len, max_seq_len, num_heads)
    out = jax.block_until_ready(out)

    ref = reference_forward(z, params, target_len, max_seq_len, num_heads)

    S = min(target_len, max_seq_len)
    assert out.shape == (B, S, num_features), out.shape
    assert bool(jnp.all(jnp.isfinite(out)))
    max_err = float(jnp.max(jnp.abs(out - ref)))
    assert max_err < 5e-2, f"mismatch vs reference: {max_err}"
    print("KERNEL_OK")
</pallas_src>

<mosaic_0001>
module attributes {stable_mosaic.version = 11 : i64} {
  func.func @kernel(%arg0: i32, %arg1: i32, %arg2: memref<2x1x8xf32, #tpu.memory_space<vmem>>, %arg3: memref<8x16xf32, #tpu.memory_space<vmem>>, %arg4: memref<8x16xf32, #tpu.memory_space<vmem>>, %arg5: memref<8x32xf32, #tpu.memory_space<vmem>>, %arg6: memref<1x32xf32, #tpu.memory_space<vmem>>, %arg7: memref<1x32xf32, #tpu.memory_space<vmem>>, %arg8: memref<1x32xf32, #tpu.memory_space<vmem>>, %arg9: memref<32x32xbf16, #tpu.memory_space<vmem>>, %arg10: memref<1x32xf32, #tpu.memory_space<vmem>>, %arg11: memref<32x128xbf16, #tpu.memory_space<vmem>>, %arg12: memref<1x128xf32, #tpu.memory_space<vmem>>, %arg13: memref<1x32x96xbf16, #tpu.memory_space<vmem>>, %arg14: memref<1x1x96xf32, #tpu.memory_space<vmem>>, %arg15: memref<1x32x32xbf16, #tpu.memory_space<vmem>>, %arg16: memref<1x1x32xf32, #tpu.memory_space<vmem>>, %arg17: memref<1x1x32xf32, #tpu.memory_space<vmem>>, %arg18: memref<1x1x32xf32, #tpu.memory_space<vmem>>, %arg19: memref<1x1x32xf32, #tpu.memory_space<vmem>>, %arg20: memref<1x1x32xf32, #tpu.memory_space<vmem>>, %arg21: memref<1x32x128xbf16, #tpu.memory_space<vmem>>, %arg22: memref<1x1x128xf32, #tpu.memory_space<vmem>>, %arg23: memref<1x128x32xbf16, #tpu.memory_space<vmem>>, %arg24: memref<1x1x32xf32, #tpu.memory_space<vmem>>, %arg25: memref<2x8x128xf32, #tpu.memory_space<vmem>>, %arg26: memref<2x8x32xf32, #tpu.memory_space<vmem>>, %arg27: memref<2x8x32xf32, #tpu.memory_space<vmem>>, %arg28: memref<8x8xf32, #tpu.memory_space<vmem>>) attributes {dimension_semantics = [#tpu.dimension_semantics<parallel>, #tpu.dimension_semantics<arbitrary>], iteration_bounds = array<i64: 2, 2>, scalar_prefetch = 0 : i64, scratch_operands = 3 : i64, tpu.core_type = #tpu.core_type<tc>, window_params = [{transform_indices = @transform_0, window_bounds = array<i64: 2, 1, 8>}, {pipeline_mode = #tpu.pipeline_mode<synchronous>, transform_indices = @transform_1, window_bounds = array<i64: 8, 16>}, {pipeline_mode = #tpu.pipeline_mode<synchronous>, transform_indices = @transform_2, window_bounds = array<i64: 8, 16>}, {pipeline_mode = #tpu.pipeline_mode<synchronous>, transform_indices = @transform_3, window_bounds = array<i64: 8, 32>}, {pipeline_mode = #tpu.pipeline_mode<synchronous>, transform_indices = @transform_4, window_bounds = array<i64: 1, 32>}, {pipeline_mode = #tpu.pipeline_mode<synchronous>, transform_indices = @transform_5, window_bounds = array<i64: 1, 32>}, {pipeline_mode = #tpu.pipeline_mode<synchronous>, transform_indices = @transform_6, window_bounds = array<i64: 1, 32>}, {pipeline_mode = #tpu.pipeline_mode<synchronous>, transform_indices = @transform_7, window_bounds = array<i64: 32, 32>}, {pipeline_mode = #tpu.pipeline_mode<synchronous>, transform_indices = @transform_8, window_bounds = array<i64: 1, 32>}, {pipeline_mode = #tpu.pipeline_mode<synchronous>, transform_indices = @transform_9, window_bounds = array<i64: 32, 128>}, {pipeline_mode = #tpu.pipeline_mode<synchronous>, transform_indices = @transform_10, window_bounds = array<i64: 1, 128>}, {transform_indices = @transform_11, window_bounds = array<i64: 1, 32, 96>}, {transform_indices = @transform_12, window_bounds = array<i64: 1, 1, 96>}, {transform_indices = @transform_13, window_bounds = array<i64: 1, 32, 32>}, {transform_indices = @transform_14, window_bounds = array<i64: 1, 1, 32>}, {transform_indices = @transform_15, window_bounds = array<i64: 1, 1, 32>}, {transform_indices = @transform_16, window_bounds = array<i64: 1, 1, 32>}, {transform_indices = @transform_17, window_bounds = array<i64: 1, 1, 32>}, {transform_indices = @transform_18, window_bounds = array<i64: 1, 1, 32>}, {transform_indices = @transform_19, window_bounds = array<i64: 1, 32, 128>}, {transform_indices = @transform_20, window_bounds = array<i64: 1, 1, 128>}, {transform_indices = @transform_21, window_bounds = array<i64: 1, 128, 32>}, {transform_indices = @transform_22, window_bounds = array<i64: 1, 1, 32>}, {transform_indices = @transform_23, window_bounds = array<i64: 2, 8, 128>}]} {
    %c0_i32 = arith.constant 0 : i32
    %0 = arith.cmpi eq, %arg1, %c0_i32 : i32
    %1 = arith.extui %0 : i1 to i32
    %c0_i32_0 = arith.constant 0 : i32
    %2 = arith.cmpi ne, %1, %c0_i32_0 : i32
    scf.if %2 {
      %208 = tpu.iota {dimensions = array<i32: 0>} : vector<8x8xi32>
      %209 = tpu.iota {dimensions = array<i32: 1>} : vector<8x8xi32>
      %210 = arith.cmpi sgt, %209, %208 : vector<8x8xi32>
      %cst_91 = arith.constant -1.000000e+30 : f32
      %cst_92 = arith.constant 0.000000e+00 : f32
      %211 = vector.broadcast %cst_91 : f32 to vector<8x8xf32>
      %212 = vector.broadcast %cst_92 : f32 to vector<8x8xf32>
      %213 = arith.select %210, %211, %212 : vector<8x8xi1>, vector<8x8xf32>
      %c0_93 = arith.constant 0 : index
      %c0_94 = arith.constant 0 : index
      %214 = vector.load %arg28[%c0_93, %c0_94] : memref<8x8xf32, #tpu.memory_space<vmem>>, vector<8x8xf32>
      tpu.vector_store %arg28[%c0_93, %c0_94], %213 {strides = array<i32>} : memref<8x8xf32, #tpu.memory_space<vmem>>, vector<8x8xf32>,
      %c0_95 = arith.constant 0 : index
      %c0_96 = arith.constant 0 : index
      %c0_97 = arith.constant 0 : index
      %215 = vector.load %arg2[%c0_95, %c0_96, %c0_97] : memref<2x1x8xf32, #tpu.memory_space<vmem>>, vector<2x1x8xf32>
      %216 = vector.shape_cast %215 : vector<2x1x8xf32> to vector<2x8xf32>
      %c0_98 = arith.constant 0 : index
      %c0_99 = arith.constant 0 : index
      %217 = vector.load %arg5[%c0_98, %c0_99] : memref<8x32xf32, #tpu.memory_space<vmem>>, vector<8x32xf32>
      %cst_100 = arith.constant dense<0.000000e+00> : vector<2x32xf32>
      %218 = tpu.matmul %216, %217, %cst_100 {dimension_numbers = #tpu.dot_dimension_numbers<[1], [0], [0], [1], [0, 0, 1, 1], [], []>} : vector<2x8xf32>, vector<8x32xf32>, vector<2x32xf32> -> vector<2x32xf32>
      %c0_101 = arith.constant 0 : index
      %c0_102 = arith.constant 0 : index
      %219 = vector.load %arg6[%c0_101, %c0_102] : memref<1x32xf32, #tpu.memory_space<vmem>>, vector<1x32xf32>
      %220 = vector.broadcast %219 : vector<1x32xf32> to vector<2x32xf32>
      %221 = arith.addf %218, %220 : vector<2x32xf32>
      %c0_103 = arith.constant 0 : index
      %c0_104 = arith.constant 0 : index
      %222 = vector.load %arg3[%c0_103, %c0_104] : memref<8x16xf32, #tpu.memory_space<vmem>>, vector<8x16xf32>
      %223 = vector.shape_cast %222 : vector<8x16xf32> to vector<1x8x16xf32>
      %c0_105 = arith.constant 0 : index
      %c0_106 = arith.constant 0 : index
      %224 = vector.load %arg4[%c0_105, %c0_106] : memref<8x16xf32, #tpu.memory_space<vmem>>, vector<8x16xf32>
      %225 = vector.shape_cast %224 : vector<8x16xf32> to vector<1x8x16xf32>
      %226 = vector.extract_strided_slice %221 {offsets = [0, 0], sizes = [2, 16], strides = [1, 1]} : vector<2x32xf32> to vector<2x16xf32>
      %227 = vector.shape_cast %226 : vector<2x16xf32> to vector<2x1x16xf32>
      %228 = vector.extract_strided_slice %221 {offsets = [0, 16], sizes = [2, 16], strides = [1, 1]} : vector<2x32xf32> to vector<2x16xf32>
      %229 = vector.shape_cast %228 : vector<2x16xf32> to vector<2x1x16xf32>
      %230 = vector.broadcast %227 : vector<2x1x16xf32> to vector<2x8x16xf32>
      %231 = vector.broadcast %223 : vector<1x8x16xf32> to vector<2x8x16xf32>
      %232 = arith.mulf %230, %231 : vector<2x8x16xf32>
      %233 = vector.broadcast %229 : vector<2x1x16xf32> to vector<2x8x16xf32>
      %234 = vector.broadcast %225 : vector<1x8x16xf32> to vector<2x8x16xf32>
      %235 = arith.mulf %233, %234 : vector<2x8x16xf32>
      %236 = arith.subf %232, %235 : vector<2x8x16xf32>
      %237 = vector.broadcast %227 : vector<2x1x16xf32> to vector<2x8x16xf32>
      %238 = vector.broadcast %225 : vector<1x8x16xf32> to vector<2x8x16xf32>
      %239 = arith.mulf %237, %238 : vector<2x8x16xf32>
      %240 = vector.broadcast %229 : vector<2x1x16xf32> to vector<2x8x16xf32>
      %241 = vector.broadcast %223 : vector<1x8x16xf32> to vector<2x8x16xf32>
      %242 = arith.mulf %240, %241 : vector<2x8x16xf32>
      %243 = arith.addf %239, %242 : vector<2x8x16xf32>
      %244 = tpu.concatenate %236, %243 in 2 : vector<2x8x16xf32>, vector<2x8x16xf32> -> vector<2x8x32xf32>
      %c0_107 = arith.constant 0 : index
      %c0_108 = arith.constant 0 : index
      %c0_109 = arith.constant 0 : index
      %245 = vector.load %arg26[%c0_107, %c0_108, %c0_109] : memref<2x8x32xf32, #tpu.memory_space<vmem>>, vector<2x8x32xf32>
      tpu.vector_store %arg26[%c0_107, %c0_108, %c0_109], %244 {strides = array<i32>} : memref<2x8x32xf32, #tpu.memory_space<vmem>>, vector<2x8x32xf32>,
    } else {
    }
    %c0 = arith.constant 0 : index
    %c0_1 = arith.constant 0 : index
    %c0_2 = arith.constant 0 : index
    %3 = vector.load %arg26[%c0, %c0_1, %c0_2] : memref<2x8x32xf32, #tpu.memory_space<vmem>>, vector<2x8x32xf32>
    %c0_3 = arith.constant 0 : index
    %c0_4 = arith.constant 0 : index
    %4 = vector.load %arg28[%c0_3, %c0_4] : memref<8x8xf32, #tpu.memory_space<vmem>>, vector<8x8xf32>
    %5 = vector.shape_cast %3 : vector<2x8x32xf32> to vector<16x32xf32>
    %6 = arith.truncf %5 : vector<16x32xf32> to vector<16x32xbf16>
    %c0_5 = arith.constant 0 : index
    %c0_6 = arith.constant 0 : index
    %c0_7 = arith.constant 0 : index
    %7 = vector.load %arg13[%c0_5, %c0_6, %c0_7] : memref<1x32x96xbf16, #tpu.memory_space<vmem>>, vector<1x32x96xbf16>
    %8 = vector.shape_cast %7 : vector<1x32x96xbf16> to vector<32x96xbf16>
    %cst = arith.constant dense<0.000000e+00> : vector<16x96xf32>
    %9 = tpu.matmul %6, %8, %cst {dimension_numbers = #tpu.dot_dimension_numbers<[1], [0], [0], [1], [0, 0, 1, 1], [], []>} : vector<16x32xbf16>, vector<32x96xbf16>, vector<16x96xf32> -> vector<16x96xf32>
    %c0_8 = arith.constant 0 : index
    %c0_9 = arith.constant 0 : index
    %c0_10 = arith.constant 0 : index
    %10 = vector.load %arg14[%c0_8, %c0_9, %c0_10] : memref<1x1x96xf32, #tpu.memory_space<vmem>>, vector<1x1x96xf32>
    %11 = vector.shape_cast %10 : vector<1x1x96xf32> to vector<1x96xf32>
    %12 = vector.broadcast %11 : vector<1x96xf32> to vector<16x96xf32>
    %13 = arith.addf %9, %12 : vector<16x96xf32>
    %14 = vector.shape_cast %13 : vector<16x96xf32> to vector<2x8x96xf32>
    %15 = vector.extract_strided_slice %14 {offsets = [0, 0, 0], sizes = [2, 8, 8], strides = [1, 1, 1]} : vector<2x8x96xf32> to vector<2x8x8xf32>
    %16 = vector.extract_strided_slice %14 {offsets = [0, 0, 32], sizes = [2, 8, 8], strides = [1, 1, 1]} : vector<2x8x96xf32> to vector<2x8x8xf32>
    %17 = vector.extract_strided_slice %14 {offsets = [0, 0, 64], sizes = [2, 8, 8], strides = [1, 1, 1]} : vector<2x8x96xf32> to vector<2x8x8xf32>
    %18 = arith.truncf %15 : vector<2x8x8xf32> to vector<2x8x8xbf16>
    %19 = arith.truncf %16 : vector<2x8x8xf32> to vector<2x8x8xbf16>
    "tpu.trace_start"() <{level = 10 : i32, message = "bqd,bkd->bqk"}> : () -> ()
    %cst_11 = arith.constant dense<0.000000e+00> : vector<2x8x8xf32>
    %20 = tpu.matmul %18, %19, %cst_11 {dimension_numbers = #tpu.dot_dimension_numbers<[2], [2], [1], [1], [0, 0, 0, 1, 1, 1], [0], [0]>} : vector<2x8x8xbf16>, vector<2x8x8xbf16>, vector<2x8x8xf32> -> vector<2x8x8xf32>
    "tpu.trace_stop"() : () -> ()
    %cst_12 = arith.constant 0.353553385 : f32
    %21 = vector.broadcast %cst_12 : f32 to vector<2x8x8xf32>
    %22 = arith.mulf %20, %21 : vector<2x8x8xf32>
    %23 = vector.shape_cast %4 : vector<8x8xf32> to vector<1x8x8xf32>
    %24 = vector.broadcast %23 : vector<1x8x8xf32> to vector<2x8x8xf32>
    %25 = arith.addf %22, %24 : vector<2x8x8xf32>
    %cst_13 = arith.constant dense<0xFF800000> : vector<2x8xf32>
    %26 = vector.multi_reduction <maximumf>, %25, %cst_13 [2] : vector<2x8x8xf32> to vector<2x8xf32>
    %27 = vector.shape_cast %26 : vector<2x8xf32> to vector<2x8x1xf32>
    %28 = vector.broadcast %27 : vector<2x8x1xf32> to vector<2x8x8xf32>
    %29 = arith.subf %25, %28 : vector<2x8x8xf32>
    %30 = math.exp %29 : vector<2x8x8xf32>
    %cst_14 = arith.constant dense<0.000000e+00> : vector<2x8xf32>
    %31 = vector.multi_reduction <add>, %30, %cst_14 [2] : vector<2x8x8xf32> to vector<2x8xf32>
    %32 = vector.shape_cast %31 : vector<2x8xf32> to vector<2x8x1xf32>
    %33 = tpu.reciprocal %32 {approx = true} : vector<2x8x1xf32> -> vector<2x8x1xf32>
    %34 = vector.broadcast %33 : vector<2x8x1xf32> to vector<2x8x8xf32>
    %35 = arith.mulf %30, %34 : vector<2x8x8xf32>
    %36 = arith.truncf %35 : vector<2x8x8xf32> to vector<2x8x8xbf16>
    %37 = arith.truncf %17 : vector<2x8x8xf32> to vector<2x8x8xbf16>
    "tpu.trace_start"() <{level = 10 : i32, message = "bqk,bkd->bqd"}> : () -> ()
    %cst_15 = arith.constant dense<0.000000e+00> : vector<2x8x8xf32>
    %38 = tpu.matmul %36, %37, %cst_15 {dimension_numbers = #tpu.dot_dimension_numbers<[2], [1], [1], [2], [0, 0, 0, 1, 1, 2], [0], [0]>} : vector<2x8x8xbf16>, vector<2x8x8xbf16>, vector<2x8x8xf32> -> vector<2x8x8xf32>
    "tpu.trace_stop"() : () -> ()
    %c0_16 = arith.constant 0 : index
    %c0_17 = arith.constant 0 : index
    %c0_18 = arith.constant 0 : index
    %39 = vector.load %arg27[%c0_16, %c0_17, %c0_18] : memref<2x8x32xf32, #tpu.memory_space<vmem>>, vector<2x8x8xf32>
    tpu.vector_store %arg27[%c0_16, %c0_17, %c0_18], %38 {strides = array<i32>} : memref<2x8x32xf32, #tpu.memory_space<vmem>>, vector<2x8x8xf32>,
    %40 = vector.extract_strided_slice %14 {offsets = [0, 0, 8], sizes = [2, 8, 8], strides = [1, 1, 1]} : vector<2x8x96xf32> to vector<2x8x8xf32>
    %41 = vector.extract_strided_slice %14 {offsets = [0, 0, 40], sizes = [2, 8, 8], strides = [1, 1, 1]} : vector<2x8x96xf32> to vector<2x8x8xf32>
    %42 = vector.extract_strided_slice %14 {offsets = [0, 0, 72], sizes = [2, 8, 8], strides = [1, 1, 1]} : vector<2x8x96xf32> to vector<2x8x8xf32>
    %43 = arith.truncf %40 : vector<2x8x8xf32> to vector<2x8x8xbf16>
    %44 = arith.truncf %41 : vector<2x8x8xf32> to vector<2x8x8xbf16>
    "tpu.trace_start"() <{level = 10 : i32, message = "bqd,bkd->bqk"}> : () -> ()
    %cst_19 = arith.constant dense<0.000000e+00> : vector<2x8x8xf32>
    %45 = tpu.matmul %43, %44, %cst_19 {dimension_numbers = #tpu.dot_dimension_numbers<[2], [2], [1], [1], [0, 0, 0, 1, 1, 1], [0], [0]>} : vector<2x8x8xbf16>, vector<2x8x8xbf16>, vector<2x8x8xf32> -> vector<2x8x8xf32>
    "tpu.trace_stop"() : () -> ()
    %cst_20 = arith.constant 0.353553385 : f32
    %46 = vector.broadcast %cst_20 : f32 to vector<2x8x8xf32>
    %47 = arith.mulf %45, %46 : vector<2x8x8xf32>
    %48 = vector.shape_cast %4 : vector<8x8xf32> to vector<1x8x8xf32>
    %49 = vector.broadcast %48 : vector<1x8x8xf32> to vector<2x8x8xf32>
    %50 = arith.addf %47, %49 : vector<2x8x8xf32>
    %cst_21 = arith.constant dense<0xFF800000> : vector<2x8xf32>
    %51 = vector.multi_reduction <maximumf>, %50, %cst_21 [2] : vector<2x8x8xf32> to vector<2x8xf32>
    %52 = vector.shape_cast %51 : vector<2x8xf32> to vector<2x8x1xf32>
    %53 = vector.broadcast %52 : vector<2x8x1xf32> to vector<2x8x8xf32>
    %54 = arith.subf %50, %53 : vector<2x8x8xf32>
    %55 = math.exp %54 : vector<2x8x8xf32>
    %cst_22 = arith.constant dense<0.000000e+00> : vector<2x8xf32>
    %56 = vector.multi_reduction <add>, %55, %cst_22 [2] : vector<2x8x8xf32> to vector<2x8xf32>
    %57 = vector.shape_cast %56 : vector<2x8xf32> to vector<2x8x1xf32>
    %58 = tpu.reciprocal %57 {approx = true} : vector<2x8x1xf32> -> vector<2x8x1xf32>
    %59 = vector.broadcast %58 : vector<2x8x1xf32> to vector<2x8x8xf32>
    %60 = arith.mulf %55, %59 : vector<2x8x8xf32>
    %61 = arith.truncf %60 : vector<2x8x8xf32> to vector<2x8x8xbf16>
    %62 = arith.truncf %42 : vector<2x8x8xf32> to vector<2x8x8xbf16>
    "tpu.trace_start"() <{level = 10 : i32, message = "bqk,bkd->bqd"}> : () -> ()
    %cst_23 = arith.constant dense<0.000000e+00> : vector<2x8x8xf32>
    %63 = tpu.matmul %61, %62, %cst_23 {dimension_numbers = #tpu.dot_dimension_numbers<[2], [1], [1], [2], [0, 0, 0, 1, 1, 2], [0], [0]>} : vector<2x8x8xbf16>, vector<2x8x8xbf16>, vector<2x8x8xf32> -> vector<2x8x8xf32>
    "tpu.trace_stop"() : () -> ()
    %c0_24 = arith.constant 0 : index
    %c0_25 = arith.constant 0 : index
    %c8 = arith.constant 8 : index
    %64 = vector.load %arg27[%c0_24, %c0_25, %c8] : memref<2x8x32xf32, #tpu.memory_space<vmem>>, vector<2x8x8xf32>
    tpu.vector_store %arg27[%c0_24, %c0_25, %c8], %63 {strides = array<i32>} : memref<2x8x32xf32, #tpu.memory_space<vmem>>, vector<2x8x8xf32>,
    %65 = vector.extract_strided_slice %14 {offsets = [0, 0, 16], sizes = [2, 8, 8], strides = [1, 1, 1]} : vector<2x8x96xf32> to vector<2x8x8xf32>
    %66 = vector.extract_strided_slice %14 {offsets = [0, 0, 48], sizes = [2, 8, 8], strides = [1, 1, 1]} : vector<2x8x96xf32> to vector<2x8x8xf32>
    %67 = vector.extract_strided_slice %14 {offsets = [0, 0, 80], sizes = [2, 8, 8], strides = [1, 1, 1]} : vector<2x8x96xf32> to vector<2x8x8xf32>
    %68 = arith.truncf %65 : vector<2x8x8xf32> to vector<2x8x8xbf16>
    %69 = arith.truncf %66 : vector<2x8x8xf32> to vector<2x8x8xbf16>
    "tpu.trace_start"() <{level = 10 : i32, message = "bqd,bkd->bqk"}> : () -> ()
    %cst_26 = arith.constant dense<0.000000e+00> : vector<2x8x8xf32>
    %70 = tpu.matmul %68, %69, %cst_26 {dimension_numbers = #tpu.dot_dimension_numbers<[2], [2], [1], [1], [0, 0, 0, 1, 1, 1], [0], [0]>} : vector<2x8x8xbf16>, vector<2x8x8xbf16>, vector<2x8x8xf32> -> vector<2x8x8xf32>
    "tpu.trace_stop"() : () -> ()
    %cst_27 = arith.constant 0.353553385 : f32
    %71 = vector.broadcast %cst_27 : f32 to vector<2x8x8xf32>
    %72 = arith.mulf %70, %71 : vector<2x8x8xf32>
    %73 = vector.shape_cast %4 : vector<8x8xf32> to vector<1x8x8xf32>
    %74 = vector.broadcast %73 : vector<1x8x8xf32> to vector<2x8x8xf32>
    %75 = arith.addf %72, %74 : vector<2x8x8xf32>
    %cst_28 = arith.constant dense<0xFF800000> : vector<2x8xf32>
    %76 = vector.multi_reduction <maximumf>, %75, %cst_28 [2] : vector<2x8x8xf32> to vector<2x8xf32>
    %77 = vector.shape_cast %76 : vector<2x8xf32> to vector<2x8x1xf32>
    %78 = vector.broadcast %77 : vector<2x8x1xf32> to vector<2x8x8xf32>
    %79 = arith.subf %75, %78 : vector<2x8x8xf32>
    %80 = math.exp %79 : vector<2x8x8xf32>
    %cst_29 = arith.constant dense<0.000000e+00> : vector<2x8xf32>
    %81 = vector.multi_reduction <add>, %80, %cst_29 [2] : vector<2x8x8xf32> to vector<2x8xf32>
    %82 = vector.shape_cast %81 : vector<2x8xf32> to vector<2x8x1xf32>
    %83 = tpu.reciprocal %82 {approx = true} : vector<2x8x1xf32> -> vector<2x8x1xf32>
    %84 = vector.broadcast %83 : vector<2x8x1xf32> to vector<2x8x8xf32>
    %85 = arith.mulf %80, %84 : vector<2x8x8xf32>
    %86 = arith.truncf %85 : vector<2x8x8xf32> to vector<2x8x8xbf16>
    %87 = arith.truncf %67 : vector<2x8x8xf32> to vector<2x8x8xbf16>
    "tpu.trace_start"() <{level = 10 : i32, message = "bqk,bkd->bqd"}> : () -> ()
    %cst_30 = arith.constant dense<0.000000e+00> : vector<2x8x8xf32>
    %88 = tpu.matmul %86, %87, %cst_30 {dimension_numbers = #tpu.dot_dimension_numbers<[2], [1], [1], [2], [0, 0, 0, 1, 1, 2], [0], [0]>} : vector<2x8x8xbf16>, vector<2x8x8xbf16>, vector<2x8x8xf32> -> vector<2x8x8xf32>
    "tpu.trace_stop"() : () -> ()
    %c0_31 = arith.constant 0 : index
    %c0_32 = arith.constant 0 : index
    %c16 = arith.constant 16 : index
    %89 = vector.load %arg27[%c0_31, %c0_32, %c16] : memref<2x8x32xf32, #tpu.memory_space<vmem>>, vector<2x8x8xf32>
    tpu.vector_store %arg27[%c0_31, %c0_32, %c16], %88 {strides = array<i32>} : memref<2x8x32xf32, #tpu.memory_space<vmem>>, vector<2x8x8xf32>,
    %90 = vector.extract_strided_slice %14 {offsets = [0, 0, 24], sizes = [2, 8, 8], strides = [1, 1, 1]} : vector<2x8x96xf32> to vector<2x8x8xf32>
    %91 = vector.extract_strided_slice %14 {offsets = [0, 0, 56], sizes = [2, 8, 8], strides = [1, 1, 1]} : vector<2x8x96xf32> to vector<2x8x8xf32>
    %92 = vector.extract_strided_slice %14 {offsets = [0, 0, 88], sizes = [2, 8, 8], strides = [1, 1, 1]} : vector<2x8x96xf32> to vector<2x8x8xf32>
    %93 = arith.truncf %90 : vector<2x8x8xf32> to vector<2x8x8xbf16>
    %94 = arith.truncf %91 : vector<2x8x8xf32> to vector<2x8x8xbf16>
    "tpu.trace_start"() <{level = 10 : i32, message = "bqd,bkd->bqk"}> : () -> ()
    %cst_33 = arith.constant dense<0.000000e+00> : vector<2x8x8xf32>
    %95 = tpu.matmul %93, %94, %cst_33 {dimension_numbers = #tpu.dot_dimension_numbers<[2], [2], [1], [1], [0, 0, 0, 1, 1, 1], [0], [0]>} : vector<2x8x8xbf16>, vector<2x8x8xbf16>, vector<2x8x8xf32> -> vector<2x8x8xf32>
    "tpu.trace_stop"() : () -> ()
    %cst_34 = arith.constant 0.353553385 : f32
    %96 = vector.broadcast %cst_34 : f32 to vector<2x8x8xf32>
    %97 = arith.mulf %95, %96 : vector<2x8x8xf32>
    %98 = vector.shape_cast %4 : vector<8x8xf32> to vector<1x8x8xf32>
    %99 = vector.broadcast %98 : vector<1x8x8xf32> to vector<2x8x8xf32>
    %100 = arith.addf %97, %99 : vector<2x8x8xf32>
    %cst_35 = arith.constant dense<0xFF800000> : vector<2x8xf32>
    %101 = vector.multi_reduction <maximumf>, %100, %cst_35 [2] : vector<2x8x8xf32> to vector<2x8xf32>
    %102 = vector.shape_cast %101 : vector<2x8xf32> to vector<2x8x1xf32>
    %103 = vector.broadcast %102 : vector<2x8x1xf32> to vector<2x8x8xf32>
    %104 = arith.subf %100, %103 : vector<2x8x8xf32>
    %105 = math.exp %104 : vector<2x8x8xf32>
    %cst_36 = arith.constant dense<0.000000e+00> : vector<2x8xf32>
    %106 = vector.multi_reduction <add>, %105, %cst_36 [2] : vector<2x8x8xf32> to vector<2x8xf32>
    %107 = vector.shape_cast %106 : vector<2x8xf32> to vector<2x8x1xf32>
    %108 = tpu.reciprocal %107 {approx = true} : vector<2x8x1xf32> -> vector<2x8x1xf32>
    %109 = vector.broadcast %108 : vector<2x8x1xf32> to vector<2x8x8xf32>
    %110 = arith.mulf %105, %109 : vector<2x8x8xf32>
    %111 = arith.truncf %110 : vector<2x8x8xf32> to vector<2x8x8xbf16>
    %112 = arith.truncf %92 : vector<2x8x8xf32> to vector<2x8x8xbf16>
    "tpu.trace_start"() <{level = 10 : i32, message = "bqk,bkd->bqd"}> : () -> ()
    %cst_37 = arith.constant dense<0.000000e+00> : vector<2x8x8xf32>
    %113 = tpu.matmul %111, %112, %cst_37 {dimension_numbers = #tpu.dot_dimension_numbers<[2], [1], [1], [2], [0, 0, 0, 1, 1, 2], [0], [0]>} : vector<2x8x8xbf16>, vector<2x8x8xbf16>, vector<2x8x8xf32> -> vector<2x8x8xf32>
    "tpu.trace_stop"() : () -> ()
    %c0_38 = arith.constant 0 : index
    %c0_39 = arith.constant 0 : index
    %c24 = arith.constant 24 : index
    %114 = vector.load %arg27[%c0_38, %c0_39, %c24] : memref<2x8x32xf32, #tpu.memory_space<vmem>>, vector<2x8x8xf32>
    tpu.vector_store %arg27[%c0_38, %c0_39, %c24], %113 {strides = array<i32>} : memref<2x8x32xf32, #tpu.memory_space<vmem>>, vector<2x8x8xf32>,
    %c0_40 = arith.constant 0 : index
    %c0_41 = arith.constant 0 : index
    %c0_42 = arith.constant 0 : index
    %115 = vector.load %arg27[%c0_40, %c0_41, %c0_42] : memref<2x8x32xf32, #tpu.memory_space<vmem>>, vector<2x8x32xf32>
    %116 = vector.shape_cast %115 : vector<2x8x32xf32> to vector<16x32xf32>
    %117 = arith.truncf %116 : vector<16x32xf32> to vector<16x32xbf16>
    %c0_43 = arith.constant 0 : index
    %c0_44 = arith.constant 0 : index
    %c0_45 = arith.constant 0 : index
    %118 = vector.load %arg15[%c0_43, %c0_44, %c0_45] : memref<1x32x32xbf16, #tpu.memory_space<vmem>>, vector<1x32x32xbf16>
    %119 = vector.shape_cast %118 : vector<1x32x32xbf16> to vector<32x32xbf16>
    %cst_46 = arith.constant dense<0.000000e+00> : vector<16x32xf32>
    %120 = tpu.matmul %117, %119, %cst_46 {dimension_numbers = #tpu.dot_dimension_numbers<[1], [0], [0], [1], [0, 0, 1, 1], [], []>} : vector<16x32xbf16>, vector<32x32xbf16>, vector<16x32xf32> -> vector<16x32xf32>
    %c0_47 = arith.constant 0 : index
    %c0_48 = arith.constant 0 : index
    %c0_49 = arith.constant 0 : index
    %121 = vector.load %arg16[%c0_47, %c0_48, %c0_49] : memref<1x1x32xf32, #tpu.memory_space<vmem>>, vector<1x1x32xf32>
    %122 = vector.shape_cast %121 : vector<1x1x32xf32> to vector<1x32xf32>
    %123 = vector.broadcast %122 : vector<1x32xf32> to vector<16x32xf32>
    %124 = arith.addf %120, %123 : vector<16x32xf32>
    %125 = vector.shape_cast %124 : vector<16x32xf32> to vector<2x8x32xf32>
    %126 = arith.addf %3, %125 : vector<2x8x32xf32>
    %c0_50 = arith.constant 0 : index
    %c0_51 = arith.constant 0 : index
    %c0_52 = arith.constant 0 : index
    %127 = vector.load %arg17[%c0_50, %c0_51, %c0_52] : memref<1x1x32xf32, #tpu.memory_space<vmem>>, vector<1x1x32xf32>
    %128 = vector.shape_cast %127 : vector<1x1x32xf32> to vector<1x32xf32>
    %c0_53 = arith.constant 0 : index
    %c0_54 = arith.constant 0 : index
    %c0_55 = arith.constant 0 : index
    %129 = vector.load %arg18[%c0_53, %c0_54, %c0_55] : memref<1x1x32xf32, #tpu.memory_space<vmem>>, vector<1x1x32xf32>
    %130 = vector.shape_cast %129 : vector<1x1x32xf32> to vector<1x32xf32>
    %cst_56 = arith.constant dense<0.000000e+00> : vector<2x8xf32>
    %131 = vector.multi_reduction <add>, %126, %cst_56 [2] : vector<2x8x32xf32> to vector<2x8xf32>
    %132 = vector.shape_cast %131 : vector<2x8xf32> to vector<2x8x1xf32>
    %cst_57 = arith.constant 3.200000e+01 : f32
    %133 = vector.broadcast %cst_57 : f32 to vector<2x8x1xf32>
    %134 = arith.divf %132, %133 : vector<2x8x1xf32>
    %135 = vector.broadcast %134 : vector<2x8x1xf32> to vector<2x8x32xf32>
    %136 = arith.subf %126, %135 : vector<2x8x32xf32>
    %137 = arith.mulf %136, %136 : vector<2x8x32xf32>
    %cst_58 = arith.constant dense<0.000000e+00> : vector<2x8xf32>
    %138 = vector.multi_reduction <add>, %137, %cst_58 [2] : vector<2x8x32xf32> to vector<2x8xf32>
    %139 = vector.shape_cast %138 : vector<2x8xf32> to vector<2x8x1xf32>
    %cst_59 = arith.constant 3.200000e+01 : f32
    %140 = vector.broadcast %cst_59 : f32 to vector<2x8x1xf32>
    %141 = arith.divf %139, %140 : vector<2x8x1xf32>
    %142 = vector.broadcast %134 : vector<2x8x1xf32> to vector<2x8x32xf32>
    %143 = arith.subf %126, %142 : vector<2x8x32xf32>
    %cst_60 = arith.constant 9.99999974E-6 : f32
    %144 = vector.broadcast %cst_60 : f32 to vector<2x8x1xf32>
    %145 = arith.addf %141, %144 : vector<2x8x1xf32>
    %146 = math.rsqrt %145 : vector<2x8x1xf32>
    %147 = vector.broadcast %146 : vector<2x8x1xf32> to vector<2x8x32xf32>
    %148 = arith.mulf %143, %147 : vector<2x8x32xf32>
    %149 = vector.shape_cast %128 : vector<1x32xf32> to vector<1x1x32xf32>
    %150 = vector.broadcast %149 : vector<1x1x32xf32> to vector<2x8x32xf32>
    %151 = arith.mulf %148, %150 : vector<2x8x32xf32>
    %152 = vector.shape_cast %130 : vector<1x32xf32> to vector<1x1x32xf32>
    %153 = vector.broadcast %152 : vector<1x1x32xf32> to vector<2x8x32xf32>
    %154 = arith.addf %151, %153 : vector<2x8x32xf32>
    %155 = vector.shape_cast %154 : vector<2x8x32xf32> to vector<16x32xf32>
    %156 = arith.truncf %155 : vector<16x32xf32> to vector<16x32xbf16>
    %c0_61 = arith.constant 0 : index
    %c0_62 = arith.constant 0 : index
    %c0_63 = arith.constant 0 : index
    %157 = vector.load %arg21[%c0_61, %c0_62, %c0_63] : memref<1x32x128xbf16, #tpu.memory_space<vmem>>, vector<1x32x128xbf16>
    %158 = vector.shape_cast %157 : vector<1x32x128xbf16> to vector<32x128xbf16>
    %cst_64 = arith.constant dense<0.000000e+00> : vector<16x128xf32>
    %159 = tpu.matmul %156, %158, %cst_64 {dimension_numbers = #tpu.dot_dimension_numbers<[1], [0], [0], [1], [0, 0, 1, 1], [], []>} : vector<16x32xbf16>, vector<32x128xbf16>, vector<16x128xf32> -> vector<16x128xf32>
    %c0_65 = arith.constant 0 : index
    %c0_66 = arith.constant 0 : index
    %c0_67 = arith.constant 0 : index
    %160 = vector.load %arg22[%c0_65, %c0_66, %c0_67] : memref<1x1x128xf32, #tpu.memory_space<vmem>>, vector<1x1x128xf32>
    %161 = vector.shape_cast %160 : vector<1x1x128xf32> to vector<1x128xf32>
    %162 = vector.broadcast %161 : vector<1x128xf32> to vector<16x128xf32>
    %163 = arith.addf %159, %162 : vector<16x128xf32>
    %cst_68 = arith.constant 0.000000e+00 : f32
    %164 = vector.broadcast %cst_68 : f32 to vector<16x128xf32>
    %165 = arith.maximumf %163, %164 : vector<16x128xf32>
    %166 = arith.truncf %165 : vector<16x128xf32> to vector<16x128xbf16>
    %c0_69 = arith.constant 0 : index
    %c0_70 = arith.constant 0 : index
    %c0_71 = arith.constant 0 : index
    %167 = vector.load %arg23[%c0_69, %c0_70, %c0_71] : memref<1x128x32xbf16, #tpu.memory_space<vmem>>, vector<1x128x32xbf16>
    %168 = vector.shape_cast %167 : vector<1x128x32xbf16> to vector<128x32xbf16>
    %cst_72 = arith.constant dense<0.000000e+00> : vector<16x32xf32>
    %169 = tpu.matmul %166, %168, %cst_72 {dimension_numbers = #tpu.dot_dimension_numbers<[1], [0], [0], [1], [0, 0, 1, 1], [], []>} : vector<16x128xbf16>, vector<128x32xbf16>, vector<16x32xf32> -> vector<16x32xf32>
    %c0_73 = arith.constant 0 : index
    %c0_74 = arith.constant 0 : index
    %c0_75 = arith.constant 0 : index
    %170 = vector.load %arg24[%c0_73, %c0_74, %c0_75] : memref<1x1x32xf32, #tpu.memory_space<vmem>>, vector<1x1x32xf32>
    %171 = vector.shape_cast %170 : vector<1x1x32xf32> to vector<1x32xf32>
    %172 = vector.broadcast %171 : vector<1x32xf32> to vector<16x32xf32>
    %173 = arith.addf %169, %172 : vector<16x32xf32>
    %174 = vector.shape_cast %173 : vector<16x32xf32> to vector<2x8x32xf32>
    %175 = arith.addf %154, %174 : vector<2x8x32xf32>
    %c0_76 = arith.constant 0 : index
    %c0_77 = arith.constant 0 : index
    %c0_78 = arith.constant 0 : index
    %176 = vector.load %arg19[%c0_76, %c0_77, %c0_78] : memref<1x1x32xf32, #tpu.memory_space<vmem>>, vector<1x1x32xf32>
    %177 = vector.shape_cast %176 : vector<1x1x32xf32> to vector<1x32xf32>
    %c0_79 = arith.constant 0 : index
    %c0_80 = arith.constant 0 : index
    %c0_81 = arith.constant 0 : index
    %178 = vector.load %arg20[%c0_79, %c0_80, %c0_81] : memref<1x1x32xf32, #tpu.memory_space<vmem>>, vector<1x1x32xf32>
    %179 = vector.shape_cast %178 : vector<1x1x32xf32> to vector<1x32xf32>
    %cst_82 = arith.constant dense<0.000000e+00> : vector<2x8xf32>
    %180 = vector.multi_reduction <add>, %175, %cst_82 [2] : vector<2x8x32xf32> to vector<2x8xf32>
    %181 = vector.shape_cast %180 : vector<2x8xf32> to vector<2x8x1xf32>
    %cst_83 = arith.constant 3.200000e+01 : f32
    %182 = vector.broadcast %cst_83 : f32 to vector<2x8x1xf32>
    %183 = arith.divf %181, %182 : vector<2x8x1xf32>
    %184 = vector.broadcast %183 : vector<2x8x1xf32> to vector<2x8x32xf32>
    %185 = arith.subf %175, %184 : vector<2x8x32xf32>
    %186 = arith.mulf %185, %185 : vector<2x8x32xf32>
    %cst_84 = arith.constant dense<0.000000e+00> : vector<2x8xf32>
    %187 = vector.multi_reduction <add>, %186, %cst_84 [2] : vector<2x8x32xf32> to vector<2x8xf32>
    %188 = vector.shape_cast %187 : vector<2x8xf32> to vector<2x8x1xf32>
    %cst_85 = arith.constant 3.200000e+01 : f32
    %189 = vector.broadcast %cst_85 : f32 to vector<2x8x1xf32>
    %190 = arith.divf %188, %189 : vector<2x8x1xf32>
    %191 = vector.broadcast %183 : vector<2x8x1xf32> to vector<2x8x32xf32>
    %192 = arith.subf %175, %191 : vector<2x8x32xf32>
    %cst_86 = arith.constant 9.99999974E-6 : f32
    %193 = vector.broadcast %cst_86 : f32 to vector<2x8x1xf32>
    %194 = arith.addf %190, %193 : vector<2x8x1xf32>
    %195 = math.rsqrt %194 : vector<2x8x1xf32>
    %196 = vector.broadcast %195 : vector<2x8x1xf32> to vector<2x8x32xf32>
    %197 = arith.mulf %192, %196 : vector<2x8x32xf32>
    %198 = vector.shape_cast %177 : vector<1x32xf32> to vector<1x1x32xf32>
    %199 = vector.broadcast %198 : vector<1x1x32xf32> to vector<2x8x32xf32>
    %200 = arith.mulf %197, %199 : vector<2x8x32xf32>
    %201 = vector.shape_cast %179 : vector<1x32xf32> to vector<1x1x32xf32>
    %202 = vector.broadcast %201 : vector<1x1x32xf32> to vector<2x8x32xf32>
    %203 = arith.addf %200, %202 : vector<2x8x32xf32>
    %c0_87 = arith.constant 0 : index
    %c0_88 = arith.constant 0 : index
    %c0_89 = arith.constant 0 : index
    %204 = vector.load %arg26[%c0_87, %c0_88, %c0_89] : memref<2x8x32xf32, #tpu.memory_space<vmem>>, vector<2x8x32xf32>
    tpu.vector_store %arg26[%c0_87, %c0_88, %c0_89], %203 {strides = array<i32>} : memref<2x8x32xf32, #tpu.memory_space<vmem>>, vector<2x8x32xf32>,
    %c1_i32 = arith.constant 1 : i32
    %205 = arith.cmpi eq, %arg1, %c1_i32 : i32
    %206 = arith.extui %205 : i1 to i32
    %c0_i32_90 = arith.constant 0 : i32
    %207 = arith.cmpi ne, %206, %c0_i32_90 : i32
    scf.if %207 {
      %c0_91 = arith.constant 0 : index
      %c0_92 = arith.constant 0 : index
      %208 = vector.load %arg7[%c0_91, %c0_92] : memref<1x32xf32, #tpu.memory_space<vmem>>, vector<1x32xf32>
      %c0_93 = arith.constant 0 : index
      %c0_94 = arith.constant 0 : index
      %209 = vector.load %arg8[%c0_93, %c0_94] : memref<1x32xf32, #tpu.memory_space<vmem>>, vector<1x32xf32>
      %cst_95 = arith.constant dense<0.000000e+00> : vector<2x8xf32>
      %210 = vector.multi_reduction <add>, %203, %cst_95 [2] : vector<2x8x32xf32> to vector<2x8xf32>
      %211 = vector.shape_cast %210 : vector<2x8xf32> to vector<2x8x1xf32>
      %cst_96 = arith.constant 3.200000e+01 : f32
      %212 = vector.broadcast %cst_96 : f32 to vector<2x8x1xf32>
      %213 = arith.divf %211, %212 : vector<2x8x1xf32>
      %214 = vector.broadcast %213 : vector<2x8x1xf32> to vector<2x8x32xf32>
      %215 = arith.subf %203, %214 : vector<2x8x32xf32>
      %216 = arith.mulf %215, %215 : vector<2x8x32xf32>
      %cst_97 = arith.constant dense<0.000000e+00> : vector<2x8xf32>
      %217 = vector.multi_reduction <add>, %216, %cst_97 [2] : vector<2x8x32xf32> to vector<2x8xf32>
      %218 = vector.shape_cast %217 : vector<2x8xf32> to vector<2x8x1xf32>
      %cst_98 = arith.constant 3.200000e+01 : f32
      %219 = vector.broadcast %cst_98 : f32 to vector<2x8x1xf32>
      %220 = arith.divf %218, %219 : vector<2x8x1xf32>
      %221 = vector.broadcast %213 : vector<2x8x1xf32> to vector<2x8x32xf32>
      %222 = arith.subf %203, %221 : vector<2x8x32xf32>
      %cst_99 = arith.constant 9.99999974E-6 : f32
      %223 = vector.broadcast %cst_99 : f32 to vector<2x8x1xf32>
      %224 = arith.addf %220, %223 : vector<2x8x1xf32>
      %225 = math.rsqrt %224 : vector<2x8x1xf32>
      %226 = vector.broadcast %225 : vector<2x8x1xf32> to vector<2x8x32xf32>
      %227 = arith.mulf %222, %226 : vector<2x8x32xf32>
      %228 = vector.shape_cast %208 : vector<1x32xf32> to vector<1x1x32xf32>
      %229 = vector.broadcast %228 : vector<1x1x32xf32> to vector<2x8x32xf32>
      %230 = arith.mulf %227, %229 : vector<2x8x32xf32>
      %231 = vector.shape_cast %209 : vector<1x32xf32> to vector<1x1x32xf32>
      %232 = vector.broadcast %231 : vector<1x1x32xf32> to vector<2x8x32xf32>
      %233 = arith.addf %230, %232 : vector<2x8x32xf32>
      %234 = vector.shape_cast %233 : vector<2x8x32xf32> to vector<16x32xf32>
      %235 = arith.truncf %234 : vector<16x32xf32> to vector<16x32xbf16>
      %c0_100 = arith.constant 0 : index
      %c0_101 = arith.constant 0 : index
      %236 = vector.load %arg9[%c0_100, %c0_101] : memref<32x32xbf16, #tpu.memory_space<vmem>>, vector<32x32xbf16>
      %cst_102 = arith.constant dense<0.000000e+00> : vector<16x32xf32>
      %237 = tpu.matmul %235, %236, %cst_102 {dimension_numbers = #tpu.dot_dimension_numbers<[1], [0], [0], [1], [0, 0, 1, 1], [], []>} : vector<16x32xbf16>, vector<32x32xbf16>, vector<16x32xf32> -> vector<16x32xf32>
      %c0_103 = arith.constant 0 : index
      %c0_104 = arith.constant 0 : index
      %238 = vector.load %arg10[%c0_103, %c0_104] : memref<1x32xf32, #tpu.memory_space<vmem>>, vector<1x32xf32>
      %239 = vector.broadcast %238 : vector<1x32xf32> to vector<16x32xf32>
      %240 = arith.addf %237, %239 : vector<16x32xf32>
      %cst_105 = arith.constant 0.000000e+00 : f32
      %241 = vector.broadcast %cst_105 : f32 to vector<16x32xf32>
      %242 = arith.maximumf %240, %241 : vector<16x32xf32>
      %243 = arith.truncf %242 : vector<16x32xf32> to vector<16x32xbf16>
      %c0_106 = arith.constant 0 : index
      %c0_107 = arith.constant 0 : index
      %244 = vector.load %arg11[%c0_106, %c0_107] : memref<32x128xbf16, #tpu.memory_space<vmem>>, vector<32x128xbf16>
      %cst_108 = arith.constant dense<0.000000e+00> : vector<16x128xf32>
      %245 = tpu.matmul %243, %244, %cst_108 {dimension_numbers = #tpu.dot_dimension_numbers<[1], [0], [0], [1], [0, 0, 1, 1], [], []>} : vector<16x32xbf16>, vector<32x128xbf16>, vector<16x128xf32> -> vector<16x128xf32>
      %c0_109 = arith.constant 0 : index
      %c0_110 = arith.constant 0 : index
      %246 = vector.load %arg12[%c0_109, %c0_110] : memref<1x128xf32, #tpu.memory_space<vmem>>, vector<1x128xf32>
      %247 = vector.broadcast %246 : vector<1x128xf32> to vector<16x128xf32>
      %248 = arith.addf %245, %247 : vector<16x128xf32>
      %249 = math.tanh %248 : vector<16x128xf32>
      %250 = vector.shape_cast %249 : vector<16x128xf32> to vector<2x8x128xf32>
      %c0_111 = arith.constant 0 : index
      %c0_112 = arith.constant 0 : index
      %c0_113 = arith.constant 0 : index
      %251 = vector.load %arg25[%c0_111, %c0_112, %c0_113] : memref<2x8x128xf32, #tpu.memory_space<vmem>>, vector<2x8x128xf32>
      tpu.vector_store %arg25[%c0_111, %c0_112, %c0_113], %250 {strides = array<i32>} : memref<2x8x128xf32, #tpu.memory_space<vmem>>, vector<2x8x128xf32>,
    } else {
    }
    return
  }
  func.func @transform_0(%arg0: i32, %arg1: i32) -> (i32, i32, i32) {
    %c0_i32 = arith.constant 0 : i32
    %c0_i32_0 = arith.constant 0 : i32
    %c0_i32_1 = arith.constant 0 : i32
    return %arg0, %c0_i32, %c0_i32_0 : i32, i32, i32
  }
  func.func @transform_1(%arg0: i32, %arg1: i32) -> (i32, i32) {
    %c0_i32 = arith.constant 0 : i32
    %c0_i32_0 = arith.constant 0 : i32
    %c0_i32_1 = arith.constant 0 : i32
    return %c0_i32, %c0_i32_0 : i32, i32
  }
  func.func @transform_2(%arg0: i32, %arg1: i32) -> (i32, i32) {
    %c0_i32 = arith.constant 0 : i32
    %c0_i32_0 = arith.constant 0 : i32
    %c0_i32_1 = arith.constant 0 : i32
    return %c0_i32, %c0_i32_0 : i32, i32
  }
  func.func @transform_3(%arg0: i32, %arg1: i32) -> (i32, i32) {
    %c0_i32 = arith.constant 0 : i32
    %c0_i32_0 = arith.constant 0 : i32
    %c0_i32_1 = arith.constant 0 : i32
    return %c0_i32, %c0_i32_0 : i32, i32
  }
  func.func @transform_4(%arg0: i32, %arg1: i32) -> (i32, i32) {
    %c0_i32 = arith.constant 0 : i32
    %c0_i32_0 = arith.constant 0 : i32
    %c0_i32_1 = arith.constant 0 : i32
    return %c0_i32, %c0_i32_0 : i32, i32
  }
  func.func @transform_5(%arg0: i32, %arg1: i32) -> (i32, i32) {
    %c0_i32 = arith.constant 0 : i32
    %c0_i32_0 = arith.constant 0 : i32
    %c0_i32_1 = arith.constant 0 : i32
    return %c0_i32, %c0_i32_0 : i32, i32
  }
  func.func @transform_6(%arg0: i32, %arg1: i32) -> (i32, i32) {
    %c0_i32 = arith.constant 0 : i32
    %c0_i32_0 = arith.constant 0 : i32
    %c0_i32_1 = arith.constant 0 : i32
    return %c0_i32, %c0_i32_0 : i32, i32
  }
  func.func @transform_7(%arg0: i32, %arg1: i32) -> (i32, i32) {
    %c0_i32 = arith.constant 0 : i32
    %c0_i32_0 = arith.constant 0 : i32
    %c0_i32_1 = arith.constant 0 : i32
    return %c0_i32, %c0_i32_0 : i32, i32
  }
  func.func @transform_8(%arg0: i32, %arg1: i32) -> (i32, i32) {
    %c0_i32 = arith.constant 0 : i32
    %c0_i32_0 = arith.constant 0 : i32
    %c0_i32_1 = arith.constant 0 : i32
    return %c0_i32, %c0_i32_0 : i32, i32
  }
  func.func @transform_9(%arg0: i32, %arg1: i32) -> (i32, i32) {
    %c0_i32 = arith.constant 0 : i32
    %c0_i32_0 = arith.constant 0 : i32
    %c0_i32_1 = arith.constant 0 : i32
    return %c0_i32, %c0_i32_0 : i32, i32
  }
  func.func @transform_10(%arg0: i32, %arg1: i32) -> (i32, i32) {
    %c0_i32 = arith.constant 0 : i32
    %c0_i32_0 = arith.constant 0 : i32
    %c0_i32_1 = arith.constant 0 : i32
    return %c0_i32, %c0_i32_0 : i32, i32
  }
  func.func @transform_11(%arg0: i32, %arg1: i32) -> (i32, i32, i32) {
    %c0_i32 = arith.constant 0 : i32
    %c0_i32_0 = arith.constant 0 : i32
    %c0_i32_1 = arith.constant 0 : i32
    return %arg1, %c0_i32, %c0_i32_0 : i32, i32, i32
  }
  func.func @transform_12(%arg0: i32, %arg1: i32) -> (i32, i32, i32) {
    %c0_i32 = arith.constant 0 : i32
    %c0_i32_0 = arith.constant 0 : i32
    %c0_i32_1 = arith.constant 0 : i32
    return %arg1, %c0_i32, %c0_i32_0 : i32, i32, i32
  }
  func.func @transform_13(%arg0: i32, %arg1: i32) -> (i32, i32, i32) {
    %c0_i32 = arith.constant 0 : i32
    %c0_i32_0 = arith.constant 0 : i32
    %c0_i32_1 = arith.constant 0 : i32
    return %arg1, %c0_i32, %c0_i32_0 : i32, i32, i32
  }
  func.func @transform_14(%arg0: i32, %arg1: i32) -> (i32, i32, i32) {
    %c0_i32 = arith.constant 0 : i32
    %c0_i32_0 = arith.constant 0 : i32
    %c0_i32_1 = arith.constant 0 : i32
    return %arg1, %c0_i32, %c0_i32_0 : i32, i32, i32
  }
  func.func @transform_15(%arg0: i32, %arg1: i32) -> (i32, i32, i32) {
    %c0_i32 = arith.constant 0 : i32
    %c0_i32_0 = arith.constant 0 : i32
    %c0_i32_1 = arith.constant 0 : i32
    return %arg1, %c0_i32, %c0_i32_0 : i32, i32, i32
  }
  func.func @transform_16(%arg0: i32, %arg1: i32) -> (i32, i32, i32) {
    %c0_i32 = arith.constant 0 : i32
    %c0_i32_0 = arith.constant 0 : i32
    %c0_i32_1 = arith.constant 0 : i32
    return %arg1, %c0_i32, %c0_i32_0 : i32, i32, i32
  }
  func.func @transform_17(%arg0: i32, %arg1: i32) -> (i32, i32, i32) {
    %c0_i32 = arith.constant 0 : i32
    %c0_i32_0 = arith.constant 0 : i32
    %c0_i32_1 = arith.constant 0 : i32
    return %arg1, %c0_i32, %c0_i32_0 : i32, i32, i32
  }
  func.func @transform_18(%arg0: i32, %arg1: i32) -> (i32, i32, i32) {
    %c0_i32 = arith.constant 0 : i32
    %c0_i32_0 = arith.constant 0 : i32
    %c0_i32_1 = arith.constant 0 : i32
    return %arg1, %c0_i32, %c0_i32_0 : i32, i32, i32
  }
  func.func @transform_19(%arg0: i32, %arg1: i32) -> (i32, i32, i32) {
    %c0_i32 = arith.constant 0 : i32
    %c0_i32_0 = arith.constant 0 : i32
    %c0_i32_1 = arith.constant 0 : i32
    return %arg1, %c0_i32, %c0_i32_0 : i32, i32, i32
  }
  func.func @transform_20(%arg0: i32, %arg1: i32) -> (i32, i32, i32) {
    %c0_i32 = arith.constant 0 : i32
    %c0_i32_0 = arith.constant 0 : i32
    %c0_i32_1 = arith.constant 0 : i32
    return %arg1, %c0_i32, %c0_i32_0 : i32, i32, i32
  }
  func.func @transform_21(%arg0: i32, %arg1: i32) -> (i32, i32, i32) {
    %c0_i32 = arith.constant 0 : i32
    %c0_i32_0 = arith.constant 0 : i32
    %c0_i32_1 = arith.constant 0 : i32
    return %arg1, %c0_i32, %c0_i32_0 : i32, i32, i32
  }
  func.func @transform_22(%arg0: i32, %arg1: i32) -> (i32, i32, i32) {
    %c0_i32 = arith.constant 0 : i32
    %c0_i32_0 = arith.constant 0 : i32
    %c0_i32_1 = arith.constant 0 : i32
    return %arg1, %c0_i32, %c0_i32_0 : i32, i32, i32
  }
  func.func @transform_23(%arg0: i32, %arg1: i32) -> (i32, i32, i32) {
    %c0_i32 = arith.constant 0 : i32
    %c0_i32_0 = arith.constant 0 : i32
    %c0_i32_1 = arith.constant 0 : i32
    return %arg0, %c0_i32, %c0_i32_0 : i32, i32, i32
  }
}

</mosaic_0001>

<bundles_post_ra>
// kernel: tpu_custom_call.1
= control target key start
LH: loop header
LB: loop body
LE: loop exit
PB: predicated region body
PF: predicated region fallthrough
CT: control target
= control target key end

     0   :  { %s4058_s0 = inlined_call_operand.vmem [shape: f32[4,1,8], index: 0, kind: input, shape index: {}]   ;;  %s4059_s1 = inlined_call_operand.vmem [shape: f32[8,16], index: 1, kind: input, shape index: {}]   ;;  %s4060_s2 = inlined_call_operand.vmem [shape: f32[8,16], index: 2, kind: input, shape index: {}]   ;;  %s4061_s3 = inlined_call_operand.vmem [shape: f32[8,32], index: 3, kind: input, shape index: {}]   ;;  %s4062_s4 = inlined_call_operand.vmem [shape: f32[1,32], index: 4, kind: input, shape index: {}]   ;;  %s4063_s5 = inlined_call_operand.vmem [shape: f32[1,32], index: 5, kind: input, shape index: {}]   ;;  %s4064_s6 = inlined_call_operand.vmem [shape: f32[1,32], index: 6, kind: input, shape index: {}]   ;;  %s4065_s7 = inlined_call_operand.vmem [shape: bf16[32,32], index: 7, kind: input, shape index: {}]   ;;  %s4066_s8 = inlined_call_operand.vmem [shape: f32[1,32], index: 8, kind: input, shape index: {}]   ;;  %s4067_s9 = inlined_call_operand.vmem [shape: bf16[32,128], index: 9, kind: input, shape index: {}]   ;;  %s4068_s10 = inlined_call_operand.vmem [shape: f32[1,128], index: 10, kind: input, shape index: {}]   ;;  %s4069_s11 = inlined_call_operand.vmem [shape: bf16[2,32,96], index: 11, kind: input, shape index: {}]   ;;  %s4070_s12 = inlined_call_operand.vmem [shape: f32[2,1,96], index: 12, kind: input, shape index: {}]   ;;  %s4071_s13 = inlined_call_operand.vmem [shape: bf16[2,32,32], index: 13, kind: input, shape index: {}]   ;;  %s4072_s14 = inlined_call_operand.vmem [shape: f32[2,1,32], index: 14, kind: input, shape index: {}]   ;;  %s4073_s15 = inlined_call_operand.vmem [shape: f32[2,1,32], index: 15, kind: input, shape index: {}]   ;;  %s4074_s16 = inlined_call_operand.vmem [shape: f32[2,1,32], index: 16, kind: input, shape index: {}]   ;;  %s4075_s17 = inlined_call_operand.vmem [shape: f32[2,1,32], index: 17, kind: input, shape index: {}]   ;;  %s4076_s18 = inlined_call_operand.vmem [shape: f32[2,1,32], index: 18, kind: input, shape index: {}]   ;;  %s4077_s19 = inlined_call_operand.vmem [shape: bf16[2,32,128], index: 19, kind: input, shape index: {}]   ;;  %s4078_s20 = inlined_call_operand.vmem [shape: f32[2,1,128], index: 20, kind: input, shape index: {}]   ;;  %s4079_s21 = inlined_call_operand.vmem [shape: bf16[2,128,32], index: 21, kind: input, shape index: {}]   ;;  %s4080_s22 = inlined_call_operand.vmem [shape: f32[2,1,32], index: 22, kind: input, shape index: {}]   ;;  %s4081_s23 = inlined_call_operand.hbm [shape: f32[4,8,128], index: 23, kind: output, shape index: {}]  }
   0x1   :  { %4100 = sst [smem:[#allocation22_spill]] %s4058_s0 }
   0x2   :  { %4101 = sst [smem:[#allocation23_spill]] %s4059_s1 }
   0x3   :  { %4102 = sst [smem:[#allocation24_spill]] %s4060_s2 }
   0x4   :  { %4103 = sst [smem:[#allocation25_spill]] %s4061_s3 }
   0x5   :  { %4104 = sst [smem:[#allocation26_spill]] %s4062_s4 }
   0x6   :  { %4105 = sst [smem:[#allocation27_spill]] %s4063_s5 }
   0x7   :  { %4106 = sst [smem:[#allocation28_spill]] %s4064_s6 }
   0x8   :  { %4107 = sst [smem:[#allocation29_spill]] %s4065_s7 }
   0x9   :  { %4108 = sst [smem:[#allocation30_spill]] %s4066_s8 }
   0xa   :  { %4109 = sst [smem:[#allocation31_spill]] %s4067_s9 }
   0xb   :  { %4110 = sst [smem:[#allocation32_spill]] %s4068_s10 }
   0xc   :  { %4111 = sst [smem:[#allocation33_spill]] %s4069_s11 }
   0xd   :  { %4112 = sst [smem:[#allocation34_spill]] %s4070_s12 }
   0xe   :  { %4113 = sst [smem:[#allocation35_spill]] %s4071_s13 }
   0xf   :  { %4114 = sst [smem:[#allocation36_spill]] %s4081_s23 }
  0x10   :  { %28 = vsyncpa [#allocation6], 0 }
  0x11   :  { %30 = vsyncpa [#allocation6 + $0x1], 0  ;;  %s3558_s4 = smov 0   ;;  %s3560_s30 = smov 0  }
  0x12   :  { %s3562_s24 = smov 0   ;;  %s3564_s25 = smov 0  }
  0x13   :  { %s3566_s5 = smov 0   ;;  %s3568_s1 = smov 0  }
  0x14   :  { %s3570_s26 = smov 0   ;;  %s3572_s2 = smov 0  }
  0x15 LB: > { %4115 = sst [smem:[#allocation8_spill]] %s3383_s4  ;;  %s2857_s6 = sadd.s32 4294967295, %s3411_s2   ;;  %s3411_s2 = sphi %s3572_s2, %s36_s2   ;;  %s3407_s26 = sphi %s3570_s26, %s4169_s26   ;;  %s3403_s1 = sphi %s3568_s1, %s4168_s1   ;;  %s3399_s5 = sphi %s3566_s5, %s4167_s5   ;;  %s3395_s25 = sphi %s3564_s25, %s4166_s25   ;;  %s3391_s24 = sphi %s3562_s24, %s4165_s24   ;;  %s3387_s30 = sphi %s3560_s30, %s4164_s30   ;;  %s3383_s4 = sphi %s3558_s4, %s4163_s4  }
  0x16   : > { %4116 = sst [smem:[#allocation9_spill]] %s3387_s30  ;;  %s2858_s27 = sadd.s32 4294967294, %s3411_s2  }
  0x17   : > { %4117 = sst [smem:[#allocation10_spill]] %s3391_s24  ;;  %s45_s7 = sadd.s32 1, %s3403_s1 }
  0x18   : > { %4118 = sst [smem:[#allocation11_spill]] %s3395_s25  ;;  %p46_p0 = scmp.ge.s32.totalorder %s45_s7, 2 }
  0x19   : > { %4119 = sst [smem:[#allocation12_spill]] %s3399_s5  ;;  %s48_s28 = sadd.s32 1, %s3407_s26 }
  0x1a   : > { %4120 = sst [smem:[#allocation13_spill]] %s3403_s1  ;;  %p613_p1 = scmp.ne.s32.totalorder %s3391_s24, %s3387_s30 }
  0x1b   : > { %4121 = sst [smem:[#allocation14_spill]] %s3407_s26  ;;  %p614_p2 = scmp.eq.s32.totalorder %s2857_s6, 3 }
  0x1c   : > { %4122 = sst [smem:[#allocation15_spill]] %s3411_s2  ;;  %s4171_s7 = smov (%p46_p0, %s45_s7), 0 }
  0x1d   : > { %4123 = sst [smem:[#allocation16_spill]] %s4171_s7  ;;  %s4173_s28 = smov (!%p46_p0, %s48_s28), %s3407_s26 }
  0x1e   : > { %p3607_p3 = por %p614_p2, %p613_p1  ;;  %p619_p4 = scmp.ne.s32.totalorder %s3387_s30, %s3383_s4 }
  0x1f   : > { %p50_p5 = scmp.ge.s32.totalorder %s4173_s28, 2  ;;  %p620_p6 = scmp.eq.s32.totalorder %s2858_s27, 3 }
  0x20   : > { %s4124_s29 = scalar_select %p3607_p3, 1, 0 }
  0x21   : > { %p2861_p7 = scmp.ge.s32.totalorder %s3411_s2, 1  ;;  %p756_p8 = scmp.lt.s32.totalorder %s3411_s2, 5 }
  0x22   : > { %4125 = sst [smem:[#allocation17_spill]] %s4124_s29  ;;  %s4175_s28 = smov (%p50_p5, %s4173_s28), 0 }
  0x23   : > { %4126 = sst [smem:[#allocation18_spill]] %s4175_s28  ;;  %p3617_p9 = por %p620_p6, %p619_p4 }
  0x24   : > { %p757_p10 = pnand %p2861_p7, %p756_p8  ;;  %s600_s0 = ssub.s32 %s3407_s26, %s4175_s28 }
  0x25   : > { %s4127_s3 = scalar_select %p3617_p9, 1, 0 }
  0x26   : > { %s603_s6 = sadd.s32 1, %s3391_s24  ;;  %p601_p11 = scmp.eq.s32.totalorder %s600_s0, 0 }
  0x27   : > { %4128 = sst [smem:[#allocation19_spill]] %s4127_s3  ;;  %760 = sbr.rel (%p757_p10) target bundleno = 5456 (0x1550), region = 112 }
  0x28   : > { %s3625_s7 = scalar_select %p601_p11, %s3391_s24, %s603_s6  }
  0x2a   : > { %4129 = sst [smem:[#allocation20_spill]] %s3625_s7 }
  0x2e   : > { %s4088_s27 = sand.u32 1, %s3387_s30   ;;  %s2863_s1 = sshll.u32 %s3399_s5, 1 }
  0x2f   : > { %s2862_s4 = sshll.u32 %s4088_s27, 4  ;;  %p864_p12 = scmp.lt.s32.totalorder %s2863_s1, 3 }
  0x30   : > { %p868_p13 = scmp.lt.s32.totalorder %s3395_s25, 1  ;;  %s4130_s0 = sld [smem:[#allocation22_spill]] }
  0x31   : > { %s4177_s1 = smov (!%p864_p12, %s2863_s1), 3  ;;  %s4132_s11 = sld [smem:[#allocation33_spill]] }
  0x32   : > { %s3633_s3 = scalar_select %p868_p13, %s3395_s25, 1 }
  0x33   : > { %s4133_s13 = sld [smem:[#allocation35_spill]]  ;;  %s3692_s30 = scalar_lea.vmem [#allocation5], %s2862_s4 }
  0x34   : > { %s2932_s27 = sshll.u32 %s3633_s3, 4  ;;  %s883_s9 = scalar_lea.vmem %s4072_s14, %s3633_s3 }
  0x35   : > { %s3676_s8 = scalar_lea.vmem %s4077_s19, %s2932_s27  ;;  %s2935_s25 = sshll.u32 %s3633_s3, 6 }
  0x36   : > { %s866_s6 = scalar_lea.vmem %s4130_s0, %s4177_s1  ;;  %s903_s0 = scalar_lea.vmem %s4078_s20, %s3633_s3 }
  0x37   : > { %s3646_s26 = scalar_lea.vmem %s4132_s11, %s2932_s27  ;;  %s3686_s2 = scalar_lea.vmem %s4079_s21, %s2935_s25 }
  0x38   : > { %s911_s12 = scalar_lea.vmem %s4080_s22, %s3633_s3  ;;  %s4135_s28 = sld [smem:[#allocation11_spill]] }
  0x39   : > { %s3651_s5 = scalar_lea.vmem %s4133_s13, %s2932_s27 }
  0x3a   : > { %4134 = sst [smem:[#allocation21_spill]] %s3651_s5 }
  0x3e   : > { %p2872_p0 = scmp.ne.s32.totalorder %s4135_s28, 0 }
  0x3f   : > { %v918_v0 = vlaneseq (!%p2872_p0)  ;;  %s4136_s27 = sld [smem:[#allocation25_spill]] (!%p2872_p0)  ;;  %s4137_s11 = sld [smem:[#allocation23_spill]] (!%p2872_p0)  ;;  %v3413_v3 = vmov (!%p2872_p0), 1966171168   ;;  %v3414_v5 = vmov (!%p2872_p0), 0.0   ;;  %vm3415_vm0 = vmmov (!%p2872_p0), 0  }
  0x40   : > { %917 = sbr.rel (%p2872_p0) target bundleno = 534 (0x216), region = 116  ;;  %v940_v4 = vunpack.c.l.s4 (!%p2872_p0), %v3413_v3  ;;  %2995 = vmatprep.subr.mxu0 (!%p2872_p0), %v3414_v5  ;;  %2997 = vmatprep.mubr.msk.f32.mxu0 (!%p2872_p0), %vm3415_vm0, %v3414_v5  ;;  %v926_v6 = vld [vmem:[%s866_s6] sm:$0x1] (!%p2872_p0)  ;;  %v927_v7 = vld [vmem:[%s866_s6 + $0x1] sm:$0x1] (!%p2872_p0)  ;;  %s3416_s4 = smov (!%p2872_p0), 16  }
  0x41   : > { %v919_v8 = vshrl.u32 (!%p2872_p0), %v918_v0, 7  ;;  %v921_v9 = vand.u32 (!%p2872_p0), 127, %v918_v0  ;;  %v938_v11 = vcombine.low (!%p2872_p0), %v926_v6, %v927_v7  ;;  %s4138_s28 = sld [smem:[#allocation24_spill]] (!%p2872_p0)  ;;  %vm924_vm2 = vcmask (!%p2872_p0), 64512   ;;  %s4139_s7 = sld [smem:[#allocation26_spill]] (!%p2872_p0) }
  0x42   : > { %v941_v10 = vunpack.c.0.s8 (!%p2872_p0), %v940_v4  ;;  %s3417_s23 = smov (!%p2872_p0), 112   ;;  %vm1104_vm3 = vcmask (!%p2872_p0), 130048   ;;  %vm1107_vm4 = vcmask (!%p2872_p0), 261120  }
  0x43   : > { %vm922_vm1 = vcmp.gt.s32.totalorder (!%p2872_p0), %v921_v9, %v919_v8  ;;  %v1052_v23 = vsub.s32 (!%p2872_p0), 0, %v919_v8 }
  0x44   : > { %v923_v13 = vsel (!%p2872_p0), %vm922_vm1, -1e+30, %v3414_v5  ;;  %v944_v14 = vsub.s32 (!%p2872_p0), %v941_v10, %v919_v8 }
  0x45   : > { %v928_v1 = vld [vmem:[%s4136_s27] sm:$0xff] (!%p2872_p0)  ;;  %925 = vst.msk [vmem:[#allocation4] sm:$0xff] (!%p2872_p0), %vm924_vm2, %v923_v13 }
  0x46   : > { %v3701_v2 = vld [vmem:[%s4137_s11] sm:$0xff] (!%p2872_p0)  ;;  %2996 = vmatpush3.msra.mxu0 (!%p2872_p0), %v928_v1  ;;  %v945_v15 = vrot.slane (!%p2872_p0), %v938_v11, %v944_v14 }
  0x47   : > { %1081 = vrot.lane.b32.xlu0 %v3701_v2, %s3416_s4  ;;  %v1026_v12 = vld [vmem:[%s4138_s28] sm:$0xff] }
  0x48   : > { %v952_v16 = vrot.slane %v945_v15, %v944_v14  ;;  %v2873_v17 = vld [vmem:[%s4139_s7] ss:$0 sm:$0xff] }
  0x4a   : > { %2998 = vmatmul.mubr.msk.f32.vlgmr.msra.gmra.mrb[0].mxu0 %vm924_vm2, %v952_v16 }
  0x4b   : > { %1063 = vrot.lane.b32.xlu0 %v1026_v12, %s3416_s4 }
  0xb9   : > { %v1082_v19 = vpop.permute.xlu0 %1081 }
  0xbd   : > { %v1064_v26 = vpop.permute.xlu0 %1063 }
 0x11d   : > { %v1021_v18 = vpop.f32.mrb[0].mxu0 }
 0x11e   : > { %v1022_v20 = vadd.f32 %v2873_v17, %v1021_v18  ;;  %v2999_v21 = vpop.f32.mrb[1].mxu0 }
 0x120   : > { %v1034_v22 = vrot.slane %v1022_v20, %v944_v14 }
 0x122   : > { %v1035_v24 = vcombine.high %v1034_v22, %v1034_v22  ;;  %v1042_v25 = vrot.slane %v1034_v22, %v944_v14 }
 0x124   : > { %v1049_v27 = vrot.slane %v1035_v24, %v944_v14  ;;  %v1053_v28 = vrot.slane %v1042_v25, %v1052_v23 }
 0x126   : > { %v1057_v29 = vrot.slane %v1049_v27, %v1052_v23  ;;  %v1066_v30 = vmul.f32 %v1064_v26, %v1053_v28  ;;  %v1084_v31 = vmul.f32 %v1082_v19, %v1053_v28  ;;  %v1078_v34 = vmul.f32 %v1053_v28, %v1026_v12 }
 0x127   : > { %v1060_v41 = vmul.f32 %v1053_v28, %v3701_v2 }
 0x128   : > { %1088 = vrot.lane.b32.xlu1 %v1084_v31, %s3417_s23  ;;  %1070 = vrot.lane.b32.xlu0 %v1066_v30, %s3417_s23  ;;  %v1085_v32 = vmul.f32 %v1082_v19, %v1057_v29  ;;  %v1067_v33 = vmul.f32 %v1064_v26, %v1057_v29  ;;  %v1079_v37 = vmul.f32 %v1057_v29, %v1026_v12 }
 0x129   : > { %v1061_v45 = vmul.f32 %v1057_v29, %v3701_v2 }
 0x12c   : > { %1090 = vrot.lane.b32.xlu1 %v1085_v32, %s3417_s23 }
 0x130   : > { %1072 = vrot.lane.b32.xlu1 %v1067_v33, %s3417_s23 }
 0x19a   : > { %v1089_v35 = vpop.permute.xlu1 %1088  ;;  %v1071_v40 = vpop.permute.xlu0 %1070 }
 0x19b   : > { %v1094_v36 = vadd.f32 %v1089_v35, %v1078_v34  ;;  %v1076_v42 = vsub.f32 %v1060_v41, %v1071_v40 }
 0x19d   : > { %1098 = vrot.lane.b32.xlu0 %v1094_v36, %s3416_s4 }
 0x19e   : > { %v1091_v38 = vpop.permute.xlu1 %1090 }
 0x19f   : > { %v1095_v39 = vadd.f32 %v1091_v38, %v1079_v37 }
 0x1a1   : > { %1100 = vrot.lane.b32.xlu1 %v1095_v39, %s3416_s4 }
 0x1a2   : > { %v1073_v43 = vpop.permute.xlu1 %1072 }
 0x1a3   : > { %v1077_v47 = vsub.f32 %v1061_v45, %v1073_v43 }
 0x20f   : > { %v1099_v44 = vpop.permute.xlu0 %1098 }
 0x210   : > { %v1105_v46 = vsel %vm1104_vm3, %v1076_v42, %v1099_v44 }
 0x211   : > { %1108 = vst.msk [vmem:[#allocation2] sm:$0xff] %vm1107_vm4, %v1105_v46 }
 0x213   : > { %v1101_v48 = vpop.permute.xlu1 %1100 }
 0x214   : > { %v1106_v49 = vsel %vm1104_vm3, %v1077_v47, %v1101_v48 }
 0x215   : > { %1109 = vst.msk [vmem:[#allocation2 + $0x8] sm:$0xff] %vm1107_vm4, %v1106_v49 }
 0x216 PF: > { %v3251_v50 = vld [vmem:[%s3646_s26] sm:$0xff]   ;;  %v3418_v51 = vmov 0.0   ;;  %v3252_v52 = vld [vmem:[%s3646_s26 + $0x8] sm:$0xff]   ;;  %vm3419_vm5 = vmmov 0   ;;  %vm1137_vm6 = vcmask 261120   ;;  %s4140_s13 = sld [smem:[#allocation34_spill]] }
 0x217   : > { %3000 = vmatprep.subr.bf16.mxu0 %v3418_v51  ;;  %3020 = vmatprep.subr.bf16.mxu1 %v3418_v51  ;;  %s3420_s27 = smov 96   ;;  %vm1187_vm7 = vcmask 64512   ;;  %s3421_s10 = smov 64   ;;  %vm1316_vm8 = vcmask 1043456   ;;  %vm1642_vm9 = vcmask 130112   ;;  %vm1877_vm10 = vcmask 195712  }
 0x218   : > { %3001 = vmatpush3.bf16.msra.mxu0 %v3251_v50  ;;  %3004 = vmatprep.mubr.msk.bf16.mxu0 %vm3419_vm5, %v3418_v51  ;;  %v3722_v53 = vld [vmem:[#allocation2] sm:$0xff]  ;;  %s3422_s1 = smov 88   ;;  %s3423_s4 = smov 120   ;;  %vm2112_vm11 = vcmask 261312  }
 0x219   : > { %3002 = vmatprep.subr.bf16.mxu0 %v3418_v51  ;;  %3022 = vmatprep.mubr.msk.bf16.mxu1 %vm3419_vm5, %v3418_v51  ;;  %s3424_s25 = smov 56   ;;  %s3425_s11 = smov 80  }
 0x21a   : > { %s3426_s28 = smov 112   ;;  %s3427_s6 = smov 48  }
 0x21b   : > { %v3758_v6 = vld [vmem:[#allocation4] sm:$0xff]  ;;  %s3428_s24 = smov 72   ;;  %s3429_s7 = smov 104  }
 0x21c   : > { %v3724_v54 = vld [vmem:[#allocation2 + $0x8] sm:$0xff]  ;;  %3003 = vmatpush3.bf16.msra.mxu0 %v3252_v52  ;;  %s4141_s5 = scalar_lea.vmem %s4140_s13, %s3633_s3  ;;  %s3430_s23 = smov 40  }
 0x21d   : > { %v1113_v55 = vpack.c.bf16 %v3724_v54, %v3722_v53  ;;  %3008 = vmatprep.subr.bf16.mxu0 %v3418_v51  ;;  %v2875_v56 = vld [vmem:[%s4141_s5] ss:$0 sm:$0xff]  ;;  %s3431_s26 = smov 8   ;;  %s3432_s29 = smov 16  }
 0x21e   : > { %s4142_s13 = sld [smem:[#allocation21_spill]]  ;;  %s3433_s5 = smov 24  }
 0x21f   : > { %3005 = vmatmul.mubr.msk.bf16.vlgmr.msra.gmra.mrb[0].mxu0 %vm1137_vm6, %v1113_v55 }
 0x220   : > { %3010 = vmatprep.mubr.msk.bf16.mxu0 %vm3419_vm5, %v3418_v51 }
 0x2f2   : > { %v1175_v57 = vpop.f32.mrb[0].mxu0 }
 0x2f3   : > { %v1176_v58 = vadd.f32 %v2875_v56, %v1175_v57  ;;  %v3006_v59 = vpop.f32.mrb[1].mxu0 }
 0x2f4   : > { %v1178_v60 = vpop.f32.mrb[2].mxu0 }
 0x2f5   : > { %v3740_v61 = vpack.c.bf16 %v1176_v58, %v1176_v58  ;;  %v1179_v62 = vadd.f32 %v2875_v56, %v1178_v60  ;;  %v3007_v63 = vpop.f32.mrb[3].mxu0 }
 0x2f7   : > { %1185 = vrot.lane.b32.xlu0 %v3740_v61, %s3420_s27  ;;  %v3743_v0 = vpack.c.bf16 %v1179_v62, %v1179_v62 }
 0x2fb   : > { %1235 = vrot.lane.b32.xlu0 %v3743_v0, %s3420_s27 }
 0x369   : > { %v1186_v1 = vpop.permute.xlu0 %1185 }
 0x36a   : > { %v1192_v2 = vsel %vm1187_vm7, %v1186_v1, 0 }
 0x36b   : > { %3009 = vmatpush3.bf16.xpose.msra.mxu0 %v1192_v2 }
 0x36c   : > { %3014 = vmatprep.subr.bf16.mxu0 %v3418_v51 }
 0x36d   : > { %v1236_v3 = vpop.permute.xlu0 %1235 }
 0x36e   : > { %v1241_v4 = vsel %vm1187_vm7, %v1236_v3, 0 }
 0x372   : > { %3011 = vmatmul.mubr.msk.bf16.vlgmr.msra.gmra.mrb[4].mxu0 %vm1187_vm7, %v3740_v61 }
 0x373   : > { %3015 = vmatpush3.bf16.xpose.msra.mxu0 %v1241_v4  ;;  %3016 = vmatprep.mubr.msk.bf16.mxu0 %vm3419_vm5, %v3418_v51 }
 0x374   : > { %3026 = vmatprep.subr.bf16.mxu0 %v3418_v51 }
 0x37a   : > { %3017 = vmatmul.mubr.msk.bf16.vlgmr.msra.gmra.mrb[8].mxu0 %vm1187_vm7, %v3743_v0 }
 0x37b   : > { %3028 = vmatprep.mubr.msk.bf16.mxu0 %vm3419_vm5, %v3418_v51 }
 0x445   : > { %v1228_v5 = vpop.f32.mrb[4].mxu0 }
 0x446   : > { %v1283_v7 = vmul.f32 0.35355338, %v1228_v5  ;;  %v3012_v8 = vpop.f32.mrb[5].mxu0 }
 0x447   : > { %v1231_v9 = vpop.f32.mrb[6].mxu0 }
 0x448   : > { %v3013_v10 = vpop.f32.mrb[7].mxu0  ;;  %v1285_v11 = vadd.f32 %v1283_v7, %v3758_v6 }
 0x44a   : > { %v1287_v12 = vsel %vm1187_vm7, %v1285_v11, -inf }
 0x44b   : > { %1288 = vmax.xlane.f32.xlu1 %v1287_v12 }
 0x44d   : > { %v1277_v13 = vpop.f32.mrb[8].mxu0 }
 0x44e   : > { %v1284_v14 = vmul.f32 0.35355338, %v1277_v13  ;;  %v3018_v15 = vpop.f32.mrb[9].mxu0 }
 0x44f   : > { %v1280_v16 = vpop.f32.mrb[10].mxu0 }
 0x450   : > { %v3019_v17 = vpop.f32.mrb[11].mxu0  ;;  %v1286_v18 = vadd.f32 %v1284_v14, %v3758_v6 }
 0x452   : > { %v1290_v19 = vsel %vm1187_vm7, %v1286_v18, -inf }
 0x453   : > { %1291 = vmax.xlane.f32.xlu1 %v1290_v19 }
 0x464   : > { %1311 = vrot.lane.b32.xlu1 %v3740_v61, %s3421_s10 }
 0x468   : > { %1360 = vrot.lane.b32.xlu1 %v3743_v0, %s3421_s10 }
 0x46c   : > { %1412 = vrot.lane.b32.xlu1 %v3740_v61, %s3422_s1 }
 0x4d8   : > { %v1289_v20 = vpop.xlane.xlu1 %1288 }
 0x4d9   : > { %v1293_v21 = vsub.f32 %v1285_v11, %v1289_v20 }
 0x4db   : > { %v1295_v22 = vmul.f32 1.442695, %v1293_v21 }
 0x4dd   : > { %3265 = vpow2.f32 %v1295_v22 }
 0x4e0   : > { %v1292_v23 = vpop.xlane.xlu1 %1291 }
 0x4e1   : > { %v1294_v24 = vsub.f32 %v1286_v18, %v1292_v23 }
 0x4e3   : > { %v1297_v25 = vmul.f32 1.442695, %v1294_v24 }
 0x4e4   : > { %v1312_v26 = vpop.permute.xlu1 %1311 }
 0x4e5   : > { %3267 = vpow2.f32 %v1297_v25  ;;  %v1318_v27 = vsel %vm1316_vm8, %v1312_v26, 0 }
 0x4e6   : > { %3021 = vmatpush3.bf16.msra.mxu1 %v1318_v27 }
 0x4e7   : > { %v3266_v28 = vpop.eup %3265  ;;  %3032 = vmatprep.subr.bf16.mxu1 %v3418_v51 }
 0x4e8   : > { %v1361_v29 = vpop.permute.xlu1 %1360  ;;  %v1299_v30 = vsel %vm1187_vm7, %v3266_v28, 0.0 }
 0x4e9   : > { %v1366_v31 = vsel %vm1316_vm8, %v1361_v29, 0  ;;  %1300 = vadd.xlane.f32.xlu0 %v1299_v30 }
 0x4ea   : > { %3027 = vmatpush3.bf16.msra.mxu0 %v1366_v31 }
 0x4eb   : > { %3038 = vmatprep.subr.bf16.mxu0 %v3418_v51 }
 0x4ec   : > { %v1413_v35 = vpop.permute.xlu1 %1412 }
 0x4ed   : > { %v1418_v40 = vsel %vm1187_vm7, %v1413_v35, 0 }
 0x4ef   : > { %v3268_v32 = vpop.eup %3267 }
 0x4f0   : > { %v1302_v33 = vsel %vm1187_vm7, %v3268_v32, 0.0 }
 0x4f1   : > { %1303 = vadd.xlane.f32.xlu1 %v1302_v33 }
 0x4ff   : > { %1410 = vrot.lane.b32.xlu0 %v3740_v61, %s3423_s4 }
 0x502   : > { %1462 = vrot.lane.b32.xlu1 %v3743_v0, %s3422_s1  ;;  %s4143_s1 = scalar_lea.vmem %s4073_s15, %s3633_s3 }
 0x506   : > { %1460 = vrot.lane.b32.xlu1 %v3743_v0, %s3423_s4 }
 0x576   : > { %v1301_v34 = vpop.xlane.xlu0 %1300 }
 0x577   : > { %3269 = vrcp.f32 %v1301_v34 }
 0x57a   : > { %v1411_v45 = vpop.permute.xlu0 %1410 }
 0x57e   : > { %v1304_v36 = vpop.xlane.xlu1 %1303 }
 0x57f   : > { %3271 = vrcp.f32 %v1304_v36 }
 0x581   : > { %v3270_v37 = vpop.eup %3269 }
 0x582   : > { %v1307_v38 = vmul.f32 %v3270_v37, %v3266_v28  ;;  %v1463_v43 = vpop.permute.xlu1 %1462 }
 0x583   : > { %v1468_v46 = vsel %vm1187_vm7, %v1463_v43, 0 }
 0x584   : > { %v1309_v39 = vpack.c.bf16 %v1307_v38, %v1307_v38 }
 0x586   : > { %3023 = vmatmul.mubr.msk.bf16.vlgmr.msra.gmra.mrb[0].mxu1 %vm1187_vm7, %v1309_v39  ;;  %v1461_v47 = vpop.permute.xlu1 %1460 }
 0x587   : > { %3033 = vmatpush3.bf16.xpose.msra.mxu1 %v1418_v40  ;;  %3034 = vmatprep.mubr.msk.bf16.mxu1 %vm3419_vm5, %v3418_v51 }
 0x588   : > { %3044 = vmatprep.subr.bf16.mxu1 %v3418_v51 }
 0x589   : > { %v3272_v41 = vpop.eup %3271 }
 0x58a   : > { %v1308_v42 = vmul.f32 %v3272_v41, %v3268_v32 }
 0x58c   : > { %v1310_v44 = vpack.c.bf16 %v1308_v42, %v1308_v42 }
 0x58e   : > { %3029 = vmatmul.mubr.msk.bf16.vlgmr.msra.gmra.mrb[12].mxu0 %vm1187_vm7, %v1310_v44  ;;  %3035 = vmatmul.mubr.msk.bf16.vlgmr.msra.gmra.mrb[4].mxu1 %vm1187_vm7, %v1411_v45 }
 0x58f   : > { %3039 = vmatpush3.bf16.xpose.msra.mxu0 %v1468_v46  ;;  %3040 = vmatprep.mubr.msk.bf16.mxu0 %vm3419_vm5, %v3418_v51 }
 0x590   : > { %3050 = vmatprep.subr.bf16.mxu0 %v3418_v51  ;;  %3046 = vmatprep.mubr.msk.bf16.mxu1 %vm3419_vm5, %v3418_v51 }
 0x596   : > { %3041 = vmatmul.mubr.msk.bf16.vlgmr.msra.gmra.mrb[16].mxu0 %vm1187_vm7, %v1461_v47 }
 0x597   : > { %3052 = vmatprep.mubr.msk.bf16.mxu0 %vm3419_vm5, %v3418_v51 }
 0x659   : > { %v1354_v48 = vpop.f32.mrb[0].mxu1 }
 0x65a   : > { %1408 = vst.msk [vmem:[#allocation3] sm:$0xff] %vm1187_vm7, %v1354_v48  ;;  %v3024_v49 = vpop.f32.mrb[1].mxu1 }
 0x65b   : > { %v1357_v50 = vpop.f32.mrb[2].mxu1 }
 0x65c   : > { %v3025_v52 = vpop.f32.mrb[3].mxu1 }
 0x661   : > { %v1402_v55 = vpop.f32.mrb[12].mxu0  ;;  %v1454_v56 = vpop.f32.mrb[4].mxu1 }
 0x662   : > { %1409 = vst.msk [vmem:[#allocation3 + $0x8] sm:$0xff] %vm1187_vm7, %v1402_v55  ;;  %v1510_v57 = vmul.f32 0.35355338, %v1454_v56  ;;  %v3030_v58 = vpop.f32.mrb[13].mxu0  ;;  %v3036_v59 = vpop.f32.mrb[5].mxu1 }
 0x663   : > { %v1405_v60 = vpop.f32.mrb[14].mxu0  ;;  %v1457_v62 = vpop.f32.mrb[6].mxu1 }
 0x664   : > { %v3031_v63 = vpop.f32.mrb[15].mxu0  ;;  %v3037_v1 = vpop.f32.mrb[7].mxu1  ;;  %v1512_v2 = vadd.f32 %v1510_v57, %v3758_v6 }
 0x666   : > { %v1514_v3 = vsel %vm1187_vm7, %v1512_v2, -inf }
 0x667   : > { %1515 = vmax.xlane.f32.xlu1 %v1514_v3 }
 0x669   : > { %v1504_v4 = vpop.f32.mrb[16].mxu0 }
 0x66a   : > { %v1511_v5 = vmul.f32 0.35355338, %v1504_v4  ;;  %v3042_v7 = vpop.f32.mrb[17].mxu0 }
 0x66b   : > { %v1507_v8 = vpop.f32.mrb[18].mxu0 }
 0x66c   : > { %v3043_v9 = vpop.f32.mrb[19].mxu0  ;;  %v1513_v10 = vadd.f32 %v1511_v5, %v3758_v6 }
 0x66e   : > { %v1517_v11 = vsel %vm1187_vm7, %v1513_v10, -inf }
 0x66f   : > { %1518 = vmax.xlane.f32.xlu0 %v1517_v11 }
 0x678   : > { %1538 = vrot.lane.b32.xlu1 %v3740_v61, %s3424_s25 }
 0x67c   : > { %1647 = vrot.lane.b32.xlu1 %v3740_v61, %s3425_s11 }
 0x685   : > { %1586 = vrot.lane.b32.xlu0 %v3743_v0, %s3424_s25 }
 0x689   : > { %1645 = vrot.lane.b32.xlu0 %v3740_v61, %s3426_s28 }
 0x6f4   : > { %v1516_v12 = vpop.xlane.xlu1 %1515 }
 0x6f5   : > { %v1520_v13 = vsub.f32 %v1512_v2, %v1516_v12 }
 0x6f7   : > { %v1522_v14 = vmul.f32 1.442695, %v1520_v13 }
 0x6f8   : > { %v1539_v15 = vpop.permute.xlu1 %1538 }
 0x6f9   : > { %3273 = vpow2.f32 %v1522_v14  ;;  %v1544_v16 = vsel %vm1316_vm8, %v1539_v15, 0 }
 0x6fa   : > { %3045 = vmatpush3.bf16.msra.mxu1 %v1544_v16 }
 0x6fb   : > { %3056 = vmatprep.subr.bf16.mxu1 %v3418_v51 }
 0x6fc   : > { %v1519_v17 = vpop.xlane.xlu0 %1518  ;;  %v1648_v26 = vpop.permute.xlu1 %1647 }
 0x6fd   : > { %v1521_v18 = vsub.f32 %v1513_v10, %v1519_v17  ;;  %v1653_v32 = vsel %vm1187_vm7, %v1648_v26, 0 }
 0x6ff   : > { %v1524_v19 = vmul.f32 1.442695, %v1521_v18 }
 0x700   : > { %v1587_v20 = vpop.permute.xlu0 %1586 }
 0x701   : > { %3275 = vpow2.f32 %v1524_v19  ;;  %v1592_v21 = vsel %vm1316_vm8, %v1587_v20, 0 }
 0x702   : > { %3051 = vmatpush3.bf16.msra.mxu0 %v1592_v21 }
 0x703   : > { %v3274_v22 = vpop.eup %3273  ;;  %3062 = vmatprep.subr.bf16.mxu0 %v3418_v51 }
 0x704   : > { %v1526_v23 = vsel %vm1187_vm7, %v3274_v22, 0.0  ;;  %v1646_v37 = vpop.permute.xlu0 %1645 }
 0x705   : > { %1527 = vadd.xlane.f32.xlu1 %v1526_v23 }
 0x70b   : > { %v3276_v24 = vpop.eup %3275 }
 0x70c   : > { %v1529_v25 = vsel %vm1187_vm7, %v3276_v24, 0.0 }
 0x70d   : > { %1530 = vadd.xlane.f32.xlu1 %v1529_v25 }
 0x71e   : > { %1697 = vrot.lane.b32.xlu1 %v3743_v0, %s3425_s11  ;;  %s4144_s11 = scalar_lea.vmem %s4074_s16, %s3633_s3 }
 0x722   : > { %1695 = vrot.lane.b32.xlu1 %v3743_v0, %s3426_s28 }
 0x792   : > { %v1528_v27 = vpop.xlane.xlu1 %1527 }
 0x793   : > { %3277 = vrcp.f32 %v1528_v27 }
 0x79a   : > { %v1531_v28 = vpop.xlane.xlu1 %1530 }
 0x79b   : > { %3279 = vrcp.f32 %v1531_v28 }
 0x79d   : > { %v3278_v29 = vpop.eup %3277 }
 0x79e   : > { %v1534_v30 = vmul.f32 %v3278_v29, %v3274_v22  ;;  %v1698_v35 = vpop.permute.xlu1 %1697 }
 0x79f   : > { %v1703_v38 = vsel %vm1187_vm7, %v1698_v35, 0 }
 0x7a0   : > { %v1536_v31 = vpack.c.bf16 %v1534_v30, %v1534_v30 }
 0x7a2   : > { %3047 = vmatmul.mubr.msk.bf16.vlgmr.msra.gmra.mrb[8].mxu1 %vm1187_vm7, %v1536_v31  ;;  %v1696_v39 = vpop.permute.xlu1 %1695 }
 0x7a3   : > { %3057 = vmatpush3.bf16.xpose.msra.mxu1 %v1653_v32  ;;  %3058 = vmatprep.mubr.msk.bf16.mxu1 %vm3419_vm5, %v3418_v51 }
 0x7a4   : > { %3068 = vmatprep.subr.bf16.mxu1 %v3418_v51 }
 0x7a5   : > { %v3280_v33 = vpop.eup %3279 }
 0x7a6   : > { %v1535_v34 = vmul.f32 %v3280_v33, %v3276_v24 }
 0x7a8   : > { %v1537_v36 = vpack.c.bf16 %v1535_v34, %v1535_v34 }
 0x7aa   : > { %3053 = vmatmul.mubr.msk.bf16.vlgmr.msra.gmra.mrb[20].mxu0 %vm1187_vm7, %v1537_v36  ;;  %3059 = vmatmul.mubr.msk.bf16.vlgmr.msra.gmra.mrb[12].mxu1 %vm1187_vm7, %v1646_v37 }
 0x7ab   : > { %3063 = vmatpush3.bf16.xpose.msra.mxu0 %v1703_v38  ;;  %3064 = vmatprep.mubr.msk.bf16.mxu0 %vm3419_vm5, %v3418_v51 }
 0x7ac   : > { %3074 = vmatprep.subr.bf16.mxu0 %v3418_v51  ;;  %3070 = vmatprep.mubr.msk.bf16.mxu1 %vm3419_vm5, %v3418_v51 }
 0x7b2   : > { %3065 = vmatmul.mubr.msk.bf16.vlgmr.msra.gmra.mrb[24].mxu0 %vm1187_vm7, %v1696_v39 }
 0x7b3   : > { %3076 = vmatprep.mubr.msk.bf16.mxu0 %vm3419_vm5, %v3418_v51 }
 0x875   : > { %v3826_v40 = vpop.f32.mrb[8].mxu1 }
 0x876   : > { %v3048_v41 = vpop.f32.mrb[9].mxu1 }
 0x877   : > { %v1583_v42 = vpop.f32.mrb[10].mxu1 }
 0x878   : > { %v3049_v43 = vpop.f32.mrb[11].mxu1 }
 0x87d   : > { %v3828_v44 = vpop.f32.mrb[20].mxu0  ;;  %v1689_v45 = vpop.f32.mrb[12].mxu1 }
 0x87e   : > { %v1745_v46 = vmul.f32 0.35355338, %v1689_v45  ;;  %v3054_v47 = vpop.f32.mrb[21].mxu0  ;;  %v3060_v48 = vpop.f32.mrb[13].mxu1 }
 0x87f   : > { %v1631_v49 = vpop.f32.mrb[22].mxu0  ;;  %v1692_v50 = vpop.f32.mrb[14].mxu1 }
 0x880   : > { %v3055_v52 = vpop.f32.mrb[23].mxu0  ;;  %v3061_v55 = vpop.f32.mrb[15].mxu1  ;;  %v1747_v56 = vadd.f32 %v1745_v46, %v3758_v6 }
 0x882   : > { %v1749_v57 = vsel %vm1187_vm7, %v1747_v56, -inf }
 0x883   : > { %1750 = vmax.xlane.f32.xlu0 %v1749_v57 }
 0x885   : > { %v1739_v58 = vpop.f32.mrb[24].mxu0 }
 0x886   : > { %v1746_v59 = vmul.f32 0.35355338, %v1739_v58  ;;  %v3066_v60 = vpop.f32.mrb[25].mxu0 }
 0x887   : > { %v1742_v62 = vpop.f32.mrb[26].mxu0 }
 0x888   : > { %v3067_v63 = vpop.f32.mrb[27].mxu0  ;;  %v1748_v1 = vadd.f32 %v1746_v59, %v3758_v6 }
 0x88a   : > { %v1752_v2 = vsel %vm1187_vm7, %v1748_v1, -inf }
 0x88b   : > { %1753 = vmax.xlane.f32.xlu1 %v1752_v2 }
 0x89c   : > { %1773 = vrot.lane.b32.xlu1 %v3740_v61, %s3427_s6 }
 0x8a0   : > { %1882 = vrot.lane.b32.xlu1 %v3740_v61, %s3428_s24 }
 0x8a4   : > { %1932 = vrot.lane.b32.xlu1 %v3743_v0, %s3428_s24 }
 0x8a8   : > { %1930 = vrot.lane.b32.xlu1 %v3743_v0, %s3429_s7 }
 0x910   : > { %v1751_v3 = vpop.xlane.xlu0 %1750 }
 0x911   : > { %v1755_v4 = vsub.f32 %v1747_v56, %v1751_v3 }
 0x913   : > { %v1757_v5 = vmul.f32 1.442695, %v1755_v4 }
 0x915   : > { %3281 = vpow2.f32 %v1757_v5 }
 0x918   : > { %v1754_v7 = vpop.xlane.xlu1 %1753 }
 0x919   : > { %v1756_v8 = vsub.f32 %v1748_v1, %v1754_v7 }
 0x91b   : > { %v1759_v9 = vmul.f32 1.442695, %v1756_v8 }
 0x91c   : > { %v1774_v10 = vpop.permute.xlu1 %1773 }
 0x91d   : > { %3283 = vpow2.f32 %v1759_v9  ;;  %v1779_v11 = vsel %vm1316_vm8, %v1774_v10, 0 }
 0x91e   : > { %3069 = vmatpush3.bf16.msra.mxu1 %v1779_v11 }
 0x91f   : > { %v3282_v12 = vpop.eup %3281  ;;  %3080 = vmatprep.subr.bf16.mxu1 %v3418_v51 }
 0x920   : > { %v1761_v13 = vsel %vm1187_vm7, %v3282_v12, 0.0  ;;  %v1883_v21 = vpop.permute.xlu1 %1882 }
 0x921   : > { %1762 = vadd.xlane.f32.xlu0 %v1761_v13  ;;  %v1888_v24 = vsel %vm1187_vm7, %v1883_v21, 0 }
 0x924   : > { %v1933_v27 = vpop.permute.xlu1 %1932 }
 0x925   : > { %v1938_v30 = vsel %vm1187_vm7, %v1933_v27, 0 }
 0x927   : > { %v3284_v14 = vpop.eup %3283 }
 0x928   : > { %v1764_v15 = vsel %vm1187_vm7, %v3284_v14, 0.0  ;;  %v1931_v31 = vpop.permute.xlu1 %1930 }
 0x929   : > { %1765 = vadd.xlane.f32.xlu0 %v1764_v15 }
 0x93f   : > { %1821 = vrot.lane.b32.xlu0 %v3743_v0, %s3427_s6 }
 0x943   : > { %1880 = vrot.lane.b32.xlu0 %v3740_v61, %s3429_s7 }
 0x9ae   : > { %v1763_v16 = vpop.xlane.xlu0 %1762 }
 0x9af   : > { %3285 = vrcp.f32 %v1763_v16 }
 0x9b6   : > { %v1766_v17 = vpop.xlane.xlu0 %1765 }
 0x9b7   : > { %3287 = vrcp.f32 %v1766_v17 }
 0x9b9   : > { %v3286_v18 = vpop.eup %3285 }
 0x9ba   : > { %v1769_v19 = vmul.f32 %v3286_v18, %v3282_v12  ;;  %v1822_v20 = vpop.permute.xlu0 %1821 }
 0x9bb   : > { %v1827_v22 = vsel %vm1316_vm8, %v1822_v20, 0  ;;  %v3254_v20 = vld [vmem:[%s4142_s13 + $0x8] sm:$0xff]  }
 0x9bc   : > { %3075 = vmatpush3.bf16.msra.mxu0 %v1827_v22  ;;  %v1771_v23 = vpack.c.bf16 %v1769_v19, %v1769_v19  ;;  %v3253_v19 = vld [vmem:[%s4142_s13] sm:$0xff]   ;;  %s4146_s13 = scalar_lea.vmem %s4076_s18, %s3633_s3 }
 0x9bd   : > { %3086 = vmatprep.subr.bf16.mxu0 %v3418_v51 }
 0x9be   : > { %3071 = vmatmul.mubr.msk.bf16.vlgmr.msra.gmra.mrb[16].mxu1 %vm1187_vm7, %v1771_v23  ;;  %v1881_v29 = vpop.permute.xlu0 %1880 }
 0x9bf   : > { %3081 = vmatpush3.bf16.xpose.msra.mxu1 %v1888_v24  ;;  %3082 = vmatprep.mubr.msk.bf16.mxu1 %vm3419_vm5, %v3418_v51 }
 0x9c0   : > { %3092 = vmatprep.subr.bf16.mxu1 %v3418_v51 }
 0x9c1   : > { %v3288_v25 = vpop.eup %3287 }
 0x9c2   : > { %v1770_v26 = vmul.f32 %v3288_v25, %v3284_v14 }
 0x9c4   : > { %v1772_v28 = vpack.c.bf16 %v1770_v26, %v1770_v26 }
 0x9c6   : > { %3077 = vmatmul.mubr.msk.bf16.vlgmr.msra.gmra.mrb[28].mxu0 %vm1187_vm7, %v1772_v28  ;;  %3083 = vmatmul.mubr.msk.bf16.vlgmr.msra.gmra.mrb[20].mxu1 %vm1187_vm7, %v1881_v29 }
 0x9c7   : > { %3087 = vmatpush3.bf16.xpose.msra.mxu0 %v1938_v30  ;;  %3088 = vmatprep.mubr.msk.bf16.mxu0 %vm3419_vm5, %v3418_v51 }
 0x9c8   : > { %3098 = vmatprep.subr.bf16.mxu0 %v3418_v51  ;;  %3094 = vmatprep.mubr.msk.bf16.mxu1 %vm3419_vm5, %v3418_v51 }
 0x9ce   : > { %3089 = vmatmul.mubr.msk.bf16.vlgmr.msra.gmra.mrb[32].mxu0 %vm1187_vm7, %v1931_v31 }
 0x9cf   : > { %3100 = vmatprep.mubr.msk.bf16.mxu0 %vm3419_vm5, %v3418_v51 }
 0xa91   : > { %v1815_v32 = vpop.f32.mrb[16].mxu1 }
 0xa92   : > { %v3072_v33 = vpop.f32.mrb[17].mxu1 }
 0xa93   : > { %v1818_v34 = vpop.f32.mrb[18].mxu1 }
 0xa94   : > { %v3073_v35 = vpop.f32.mrb[19].mxu1  ;;  %v2895_v34 = vld [vmem:[%s883_s9] ss:$0 sm:$0xff] }
 0xa99   : > { %v1863_v36 = vpop.f32.mrb[28].mxu0  ;;  %v1924_v37 = vpop.f32.mrb[20].mxu1 }
 0xa9a   : > { %v1980_v38 = vmul.f32 0.35355338, %v1924_v37  ;;  %v3078_v39 = vpop.f32.mrb[29].mxu0  ;;  %v3084_v41 = vpop.f32.mrb[21].mxu1 }
 0xa9b   : > { %v1866_v42 = vpop.f32.mrb[30].mxu0  ;;  %v1927_v43 = vpop.f32.mrb[22].mxu1 }
 0xa9c   : > { %v3079_v45 = vpop.f32.mrb[31].mxu0  ;;  %v3085_v46 = vpop.f32.mrb[23].mxu1  ;;  %v1982_v47 = vadd.f32 %v1980_v38, %v3758_v6 }
 0xa9e   : > { %v1984_v48 = vsel %vm1187_vm7, %v1982_v47, -inf }
 0xa9f   : > { %1985 = vmax.xlane.f32.xlu0 %v1984_v48 }
 0xaa1   : > { %v1974_v49 = vpop.f32.mrb[32].mxu0 }
 0xaa2   : > { %v1981_v50 = vmul.f32 0.35355338, %v1974_v49  ;;  %v3090_v52 = vpop.f32.mrb[33].mxu0 }
 0xaa3   : > { %v1977_v55 = vpop.f32.mrb[34].mxu0 }
 0xaa4   : > { %v3091_v56 = vpop.f32.mrb[35].mxu0  ;;  %v1983_v57 = vadd.f32 %v1981_v50, %v3758_v6 }
 0xaa6   : > { %v1987_v58 = vsel %vm1187_vm7, %v1983_v57, -inf }
 0xaa7   : > { %1988 = vmax.xlane.f32.xlu1 %v1987_v58  ;;  %v3255_v58 = vld [vmem:[%s3676_s8] sm:$0xff]  }
 0xab8   : > { %2008 = vrot.lane.b32.xlu1 %v3740_v61, %s3430_s23 }
 0xabc   : > { %1636 = vrot.lane.b32.xlu1 %v3826_v40, %s3431_s26 }
 0xac0   : > { %1638 = vrot.lane.b32.xlu1 %v3828_v44, %s3431_s26 }
 0xac4   : > { %1873 = vrot.lane.b32.xlu1 %v1863_v36, %s3432_s29 }
 0xb2c   : > { %v1986_v59 = vpop.xlane.xlu0 %1985 }
 0xb2d   : > { %v1990_v60 = vsub.f32 %v1982_v47, %v1986_v59  ;;  %v3256_v59 = vld [vmem:[%s3676_s8 + $0x8] sm:$0xff]  }
 0xb2f   : > { %v1992_v62 = vmul.f32 1.442695, %v1990_v60  ;;  %v3257_v60 = vld [vmem:[%s3686_s2] sm:$0xff]  }
 0xb31   : > { %3289 = vpow2.f32 %v1992_v62  ;;  %v3258_v62 = vld [vmem:[%s3686_s2 + $0x8] sm:$0xff]  }
 0xb34   : > { %v1989_v6 = vpop.xlane.xlu1 %1988 }
 0xb35   : > { %v1991_v63 = vsub.f32 %v1983_v57, %v1989_v6  ;;  %v3259_v6 = vld [vmem:[%s3686_s2 + $0x10] sm:$0xff]  }
 0xb37   : > { %v1994_v1 = vmul.f32 1.442695, %v1991_v63  ;;  %v3260_v63 = vld [vmem:[%s3686_s2 + $0x18] sm:$0xff]  }
 0xb38   : > { %v2009_v2 = vpop.permute.xlu1 %2008 }
 0xb39   : > { %3291 = vpow2.f32 %v1994_v1  ;;  %v2014_v61 = vsel %vm1316_vm8, %v2009_v2, 0  ;;  %v3261_v1 = vld [vmem:[%s3686_s2 + $0x20] sm:$0xff]   ;;  %v3262_v2 = vld [vmem:[%s3686_s2 + $0x28] sm:$0xff]  }
 0xb3a   : > { %3093 = vmatpush3.bf16.msra.mxu1 %v2014_v61 }
 0xb3b   : > { %v3290_v3 = vpop.eup %3289  ;;  %3104 = vmatprep.subr.bf16.mxu1 %v3418_v51 }
 0xb3c   : > { %v1637_v40 = vpop.permute.xlu1 %1636  ;;  %v1996_v44 = vsel %vm1187_vm7, %v3290_v3, 0.0 }
 0xb3d   : > { %1643 = vst.msk [vmem:[#allocation3] sm:$0xff] %vm1642_vm9, %v1637_v40  ;;  %1997 = vadd.xlane.f32.xlu0 %v1996_v44 }
 0xb40   : > { %v1639_v4 = vpop.permute.xlu1 %1638 }
 0xb41   : > { %1644 = vst.msk [vmem:[#allocation3 + $0x8] sm:$0xff] %vm1642_vm9, %v1639_v4 }
 0xb43   : > { %v3292_v5 = vpop.eup %3291 }
 0xb44   : > { %v1874_v7 = vpop.permute.xlu1 %1873  ;;  %v1999_v8 = vsel %vm1187_vm7, %v3292_v5, 0.0 }
 0xb45   : > { %1879 = vst.msk [vmem:[#allocation3 + $0x8] sm:$0xff] %vm1877_vm10, %v1874_v7  ;;  %2000 = vadd.xlane.f32.xlu0 %v1999_v8 }
 0xb5b   : > { %2056 = vrot.lane.b32.xlu0 %v3743_v0, %s3430_s23 }
 0xb5f   : > { %1871 = vrot.lane.b32.xlu0 %v1815_v32, %s3432_s29 }
 0xbca   : > { %v1998_v9 = vpop.xlane.xlu0 %1997 }
 0xbcb   : > { %3293 = vrcp.f32 %v1998_v9  ;;  %v2899_v9 = vld [vmem:[%s4143_s1] ss:$0 sm:$0xff] }
 0xbd2   : > { %v2001_v10 = vpop.xlane.xlu0 %2000 }
 0xbd3   : > { %3295 = vrcp.f32 %v2001_v10 }
 0xbd5   : > { %v3294_v11 = vpop.eup %3293 }
 0xbd6   : > { %v2004_v12 = vmul.f32 %v3294_v11, %v3290_v3  ;;  %v2057_v13 = vpop.permute.xlu0 %2056 }
 0xbd7   : > { %v2062_v14 = vsel %vm1316_vm8, %v2057_v13, 0  ;;  %v2900_v13 = vld [vmem:[%s4144_s11] ss:$0 sm:$0xff] }
 0xbd8   : > { %3099 = vmatpush3.bf16.msra.mxu0 %v2062_v14  ;;  %v2006_v15 = vpack.c.bf16 %v2004_v12, %v2004_v12 }
 0xbd9   : > { %3112 = vmatprep.subr.bf16.mxu0 %v3418_v51 }
 0xbda   : > { %v1872_v16 = vpop.permute.xlu0 %1871  ;;  %3095 = vmatmul.mubr.msk.bf16.vlgmr.msra.gmra.mrb[24].mxu1 %vm1187_vm7, %v2006_v15 }
 0xbdb   : > { %1878 = vst.msk [vmem:[#allocation3] sm:$0xff] %vm1877_vm10, %v1872_v16  ;;  %3108 = vmatprep.mubr.msk.bf16.mxu1 %vm3419_vm5, %v3418_v51  ;;  %3105 = vmatpush3.bf16.msra.mxu1 %v3253_v19  ;;  %v2901_v19 = vld [vmem:[%s903_s0] ss:$0 sm:$0xff] }
 0xbdc   : > { %3106 = vmatprep.subr.bf16.mxu1 %v3418_v51 }
 0xbdd   : > { %v3296_v0 = vpop.eup %3295 }
 0xbde   : > { %v2005_v17 = vmul.f32 %v3296_v0, %v3292_v5 }
 0xbdf   : > { %3107 = vmatpush3.bf16.msra.mxu1 %v3254_v20 }
 0xbe0   : > { %v2007_v18 = vpack.c.bf16 %v2005_v17, %v2005_v17  ;;  %3120 = vmatprep.subr.bf16.mxu1 %v3418_v51  ;;  %v3263_v17 = vld [vmem:[%s3686_s2 + $0x30] sm:$0xff]  }
 0xbe2   : > { %3101 = vmatmul.mubr.msk.bf16.vlgmr.msra.gmra.mrb[36].mxu0 %vm1187_vm7, %v2007_v18  ;;  %v3264_v18 = vld [vmem:[%s3686_s2 + $0x38] sm:$0xff]  }
 0xbe3   : > { %3116 = vmatprep.mubr.msk.bf16.mxu0 %vm3419_vm5, %v3418_v51  ;;  %3113 = vmatpush3.bf16.msra.mxu0 %v3255_v58 }
 0xbe4   : > { %3114 = vmatprep.subr.bf16.mxu0 %v3418_v51 }
 0xbe7   : > { %3115 = vmatpush3.bf16.msra.mxu0 %v3256_v59 }
 0xcad   : > { %v2050_v21 = vpop.f32.mrb[24].mxu1 }
 0xcae   : > { %2106 = vrot.lane.b32.xlu0 %v2050_v21, %s3433_s5  ;;  %v3096_v22 = vpop.f32.mrb[25].mxu1 }
 0xcaf   : > { %v2053_v23 = vpop.f32.mrb[26].mxu1 }
 0xcb0   : > { %v3097_v24 = vpop.f32.mrb[27].mxu1 }
 0xcb5   : > { %v2098_v25 = vpop.f32.mrb[36].mxu0 }
 0xcb6   : > { %2108 = vrot.lane.b32.xlu1 %v2098_v25, %s3433_s5  ;;  %v3102_v26 = vpop.f32.mrb[37].mxu0  ;;  %s4147_s5 = sld [smem:[#allocation11_spill]] }
 0xcb7   : > { %v2101_v27 = vpop.f32.mrb[38].mxu0 }
 0xcb8   : > { %v3103_v28 = vpop.f32.mrb[39].mxu0 }
 0xcbc   : > { %p2916_p1 = scmp.ne.s32.totalorder %s4147_s5, 1 }
 0xcbd   : > { %s4148_s10 = sld [smem:[#allocation29_spill]] (!%p2916_p1)  ;;  %vm3435_vm12 = vmmov (!%p2916_p1), 0   ;;  %s4149_s25 = sld [smem:[#allocation27_spill]] (!%p2916_p1) }
 0xcbe   : > { %s4150_s6 = sld [smem:[#allocation28_spill]] (!%p2916_p1)  ;;  %s4151_s2 = sld [smem:[#allocation31_spill]] (!%p2916_p1) }
 0xcbf   : > { %s4153_s5 = sld [smem:[#allocation30_spill]] (!%p2916_p1)  ;;  %s4154_s9 = sld [smem:[#allocation32_spill]] (!%p2916_p1) }
 0xcc4   : > { %s4152_s0 = smov (!%p2916_p1), %s4151_s2 }
 0xd20   : > { %v2107_v29 = vpop.permute.xlu0 %2106 }
 0xd21   : > { %2113 = vst.msk [vmem:[#allocation3] sm:$0xff] %vm2112_vm11, %v2107_v29 }
 0xd28   : > { %v2109_v30 = vpop.permute.xlu1 %2108  ;;  %v2115_v31 = vld [vmem:[#allocation3] sm:$0xff] }
 0xd29   : > { %2114 = vst.msk [vmem:[#allocation3 + $0x8] sm:$0xff] %vm2112_vm11, %v2109_v30 }
 0xd30   : > { %v2116_v32 = vld [vmem:[#allocation3 + $0x8] sm:$0xff] }
 0xd31   : > { %v2117_v33 = vpack.c.bf16 %v2116_v32, %v2115_v31 }
 0xd33   : > { %3109 = vmatmul.mubr.msk.bf16.vlgmr.msra.gmra.mrb[28].mxu1 %vm1137_vm6, %v2117_v33 }
 0xd34   : > { %3136 = vmatprep.mubr.msk.bf16.mxu1 %vm3419_vm5, %v3418_v51  ;;  %3121 = vmatpush3.bf16.msra.mxu1 %v3257_v60 }
 0xd35   : > { %3122 = vmatprep.subr.bf16.mxu1 %v3418_v51 }
 0xd38   : > { %3123 = vmatpush3.bf16.msra.mxu1 %v3258_v62 }
 0xd39   : > { %3124 = vmatprep.subr.bf16.mxu1 %v3418_v51 }
 0xd3c   : > { %3125 = vmatpush3.bf16.msra.mxu1 %v3259_v6  ;;  %v2915_v6 = vld [vmem:[%s4146_s13] ss:$0 sm:$0xff] }
 0xd3d   : > { %3126 = vmatprep.subr.bf16.mxu1 %v3418_v51 }
 0xd40   : > { %3127 = vmatpush3.bf16.msra.mxu1 %v3260_v63 }
 0xd41   : > { %3128 = vmatprep.subr.bf16.mxu1 %v3418_v51 }
 0xd44   : > { %3129 = vmatpush3.bf16.msra.mxu1 %v3261_v1 }
 0xd45   : > { %3130 = vmatprep.subr.bf16.mxu1 %v3418_v51 }
 0xd48   : > { %3131 = vmatpush3.bf16.msra.mxu1 %v3262_v2 }
 0xd49   : > { %3132 = vmatprep.subr.bf16.mxu1 %v3418_v51 }
 0xd4c   : > { %3133 = vmatpush3.bf16.msra.mxu1 %v3263_v17 }
 0xd4d   : > { %3134 = vmatprep.subr.bf16.mxu1 %v3418_v51  ;;  %v2905_v51 = vld [vmem:[%s911_s12] ss:$0 sm:$0xff]  ;;  %s4145_s12 = scalar_lea.vmem %s4075_s17, %s3633_s3 }
 0xd4e   : > { %v2914_v59 = vld [vmem:[%s4145_s12] ss:$0 sm:$0xff] }
 0xd50   : > { %3135 = vmatpush3.bf16.msra.mxu1 %v3264_v18 }
 0xe06   : > { %v2178_v35 = vpop.f32.mrb[28].mxu1 }
 0xe07   : > { %v2179_v36 = vadd.f32 %v2895_v34, %v2178_v35  ;;  %v3110_v37 = vpop.f32.mrb[29].mxu1 }
 0xe08   : > { %v2181_v38 = vpop.f32.mrb[30].mxu1 }
 0xe09   : > { %v2182_v39 = vadd.f32 %v2895_v34, %v2181_v38  ;;  %v3111_v41 = vpop.f32.mrb[31].mxu1  ;;  %v2185_v42 = vadd.f32 %v2179_v36, %v3722_v53 }
 0xe0b   : > { %v2189_v43 = vsel %vm1137_vm6, %v2185_v42, 0.0  ;;  %v2186_v45 = vadd.f32 %v2182_v39, %v3724_v54 }
 0xe0c   : > { %2190 = vadd.xlane.f32.xlu0 %v2189_v43 }
 0xe0d   : > { %v2192_v46 = vsel %vm1137_vm6, %v2186_v45, 0.0 }
 0xe0e   : > { %2193 = vadd.xlane.f32.xlu1 %v2192_v46 }
 0xe99   : > { %v2191_v47 = vpop.xlane.xlu0 %2190 }
 0xe9a   : > { %v2196_v48 = vmul.f32 0.03125, %v2191_v47 }
 0xe9b   : > { %v2194_v49 = vpop.xlane.xlu1 %2193 }
 0xe9c   : > { %v2198_v50 = vsub.f32 %v2185_v42, %v2196_v48  ;;  %v2197_v52 = vmul.f32 0.03125, %v2194_v49 }
 0xe9e   : > { %v2199_v55 = vsub.f32 %v2186_v45, %v2197_v52  ;;  %v2200_v56 = vmul.f32 %v2198_v50, %v2198_v50 }
 0xea0   : > { %v2202_v53 = vsel %vm1137_vm6, %v2200_v56, 0.0  ;;  %v2201_v57 = vmul.f32 %v2199_v55, %v2199_v55 }
 0xea1   : > { %2203 = vadd.xlane.f32.xlu0 %v2202_v53 }
 0xea2   : > { %v2205_v54 = vsel %vm1137_vm6, %v2201_v57, 0.0 }
 0xea5   : > { %2206 = vadd.xlane.f32.xlu0 %v2205_v54 }
 0xf2e   : > { %v2204_v61 = vpop.xlane.xlu0 %2203 }
 0xf2f   : > { %v2208_v3 = vmul.f32 0.03125, %v2204_v61 }
 0xf31   : > { %v2210_v40 = vadd.f32 1e-05, %v2208_v3 }
 0xf32   : > { %v2207_v44 = vpop.xlane.xlu0 %2206 }
 0xf33   : > { %3297 = vrsqrt.f32 %v2210_v40  ;;  %v2209_v4 = vmul.f32 0.03125, %v2207_v44 }
 0xf35   : > { %v2211_v5 = vadd.f32 1e-05, %v2209_v4 }
 0xf37   : > { %3299 = vrsqrt.f32 %v2211_v5 }
 0xf3d   : > { %v3298_v7 = vpop.eup %3297 }
 0xf3e   : > { %v2214_v8 = vmul.f32 %v3298_v7, %v2198_v50 }
 0xf40   : > { %v2222_v11 = vmul.f32 %v2899_v9, %v2214_v8 }
 0xf41   : > { %v3300_v10 = vpop.eup %3299 }
 0xf42   : > { %v2215_v12 = vmul.f32 %v3300_v10, %v2199_v55  ;;  %v2230_v15 = vadd.f32 %v2900_v13, %v2222_v11 }
 0xf44   : > { %v2223_v14 = vmul.f32 %v2899_v9, %v2215_v12 }
 0xf46   : > { %v2231_v16 = vadd.f32 %v2900_v13, %v2223_v14 }
 0xf48   : > { %v2232_v0 = vpack.c.bf16 %v2231_v16, %v2230_v15 }
 0xf4a   : > { %3117 = vmatmul.mubr.msk.bf16.vlgmr.msra.gmra.mrb[40].mxu0 %vm1137_vm6, %v2232_v0  ;;  %v3306_v0 = vld [vmem:[%s4148_s10 + $0x8] sm:$0xff] (!%p2916_p1)  }
0x101d   : > { %v2293_v20 = vpop.f32.mrb[40].mxu0 }
0x101e   : > { %v2294_v21 = vadd.f32 %v2901_v19, %v2293_v20  ;;  %v3118_v22 = vpop.f32.mrb[41].mxu0 }
0x101f   : > { %v2296_v23 = vpop.f32.mrb[42].mxu0 }
0x1020   : > { %v2297_v24 = vadd.f32 %v2901_v19, %v2296_v23  ;;  %v3119_v25 = vpop.f32.mrb[43].mxu0  ;;  %v2300_v26 = vmax.f32 %v2294_v21, 0.0 }
0x1021   : > { %v2917_v25 = vld [vmem:[%s4149_s25] ss:$0 sm:$0xff] (!%p2916_p1) }
0x1022   : > { %v2301_v27 = vmax.f32 %v2297_v24, 0.0 }
0x1024   : > { %v2302_v28 = vpack.c.bf16 %v2301_v27, %v2300_v26 }
0x1026   : > { %3137 = vmatmul.mubr.bf16.vlgmr.msra.gmra.mrb[32].mxu1 %v2302_v28 }
0x10f9   : > { %v2408_v29 = vpop.f32.mrb[32].mxu1 }
0x10fa   : > { %v2409_v30 = vadd.f32 %v2905_v51, %v2408_v29  ;;  %v3138_v31 = vpop.f32.mrb[33].mxu1 }
0x10fb   : > { %v2411_v32 = vpop.f32.mrb[34].mxu1 }
0x10fc   : > { %v2412_v33 = vadd.f32 %v2905_v51, %v2411_v32  ;;  %v3139_v34 = vpop.f32.mrb[35].mxu1  ;;  %v2415_v35 = vadd.f32 %v2409_v30, %v2230_v15  ;;  %v3305_v15 = vld [vmem:[%s4148_s10] sm:$0xff] (!%p2916_p1)  }
0x10fd   : > { %v2918_v51 = vld [vmem:[%s4150_s6] ss:$0 sm:$0xff] (!%p2916_p1)  ;;  %v3308_v34 = vld [vmem:[%s4152_s0 + $0x8] sm:$0xff] (!%p2916_p1)  }
0x10fe   : > { %v2419_v36 = vsel %vm1137_vm6, %v2415_v35, 0.0  ;;  %v2416_v37 = vadd.f32 %v2412_v33, %v2231_v16  ;;  %v3434_v16 = vmov (!%p2916_p1), 0.0   ;;  %v3307_v33 = vld [vmem:[%s4151_s2] sm:$0xff] (!%p2916_p1)  }
0x10ff   : > { %2420 = vadd.xlane.f32.xlu1 %v2419_v36  ;;  %3140 = vmatprep.subr.bf16.mxu0 (!%p2916_p1), %v3434_v16 }
0x1100   : > { %v2422_v38 = vsel %vm1137_vm6, %v2416_v37, 0.0  ;;  %3144 = vmatprep.mubr.msk.bf16.mxu0 (!%p2916_p1), %vm3435_vm12, %v3434_v16  ;;  %3141 = vmatpush3.bf16.msra.mxu0 (!%p2916_p1), %v3305_v15 }
0x1101   : > { %2423 = vadd.xlane.f32.xlu0 %v2422_v38  ;;  %3148 = vmatprep.subr.bf16.mxu1 (!%p2916_p1), %v3434_v16 }
0x1102   : > { %3142 = vmatprep.subr.bf16.mxu0 (!%p2916_p1), %v3434_v16  ;;  %3152 = vmatprep.mubr.msk.bf16.mxu1 (!%p2916_p1), %vm3435_vm12, %v3434_v16 }
0x1103   : > { %3149 = vmatpush3.bf16.msra.mxu1 (!%p2916_p1), %v3307_v33 }
0x1104   : > { %3143 = vmatpush3.bf16.msra.mxu0 (!%p2916_p1), %v3306_v0  ;;  %3150 = vmatprep.subr.bf16.mxu1 (!%p2916_p1), %v3434_v16 }
0x1107   : > { %3151 = vmatpush3.bf16.msra.mxu1 (!%p2916_p1), %v3308_v34 }
0x118c   : > { %v2421_v39 = vpop.xlane.xlu1 %2420 }
0x118d   : > { %v2425_v41 = vmul.f32 0.03125, %v2421_v39 }
0x118e   : > { %v2424_v42 = vpop.xlane.xlu0 %2423 }
0x118f   : > { %v2427_v43 = vsub.f32 %v2415_v35, %v2425_v41  ;;  %v2426_v45 = vmul.f32 0.03125, %v2424_v42  ;;  %v2919_v35 = vld [vmem:[%s4153_s5] ss:$0 sm:$0xff] (!%p2916_p1) }
0x1191   : > { %v2428_v46 = vsub.f32 %v2416_v37, %v2426_v45  ;;  %v2429_v47 = vmul.f32 %v2427_v43, %v2427_v43 }
0x1193   : > { %v2431_v48 = vsel %vm1137_vm6, %v2429_v47, 0.0  ;;  %v2430_v49 = vmul.f32 %v2428_v46, %v2428_v46  ;;  %v2923_v47 = vld [vmem:[%s4154_s9] ss:$0 sm:$0xff] (!%p2916_p1) }
0x1194   : > { %2432 = vadd.xlane.f32.xlu1 %v2431_v48 }
0x1195   : > { %v2434_v50 = vsel %vm1137_vm6, %v2430_v49, 0.0 }
0x1196   : > { %2435 = vadd.xlane.f32.xlu0 %v2434_v50 }
0x1221   : > { %v2433_v52 = vpop.xlane.xlu1 %2432 }
0x1222   : > { %v2437_v55 = vmul.f32 0.03125, %v2433_v52 }
0x1223   : > { %v2436_v56 = vpop.xlane.xlu0 %2435 }
0x1224   : > { %v2439_v53 = vadd.f32 1e-05, %v2437_v55  ;;  %v2438_v57 = vmul.f32 0.03125, %v2436_v56 }
0x1226   : > { %3301 = vrsqrt.f32 %v2439_v53  ;;  %v2440_v54 = vadd.f32 1e-05, %v2438_v57 }
0x1228   : > { %3303 = vrsqrt.f32 %v2440_v54 }
0x1230   : > { %v3302_v58 = vpop.eup %3301 }
0x1231   : > { %v2443_v60 = vmul.f32 %v3302_v58, %v2427_v43 }
0x1232   : > { %v3304_v62 = vpop.eup %3303 }
0x1233   : > { %v2451_v63 = vmul.f32 %v2914_v59, %v2443_v60  ;;  %v2444_v1 = vmul.f32 %v3304_v62, %v2428_v46  ;;  %2466 = sbr.rel (%p2916_p1) target bundleno = 5430 (0x1536), region = 120 }
0x1235   : > { %v2459_v2 = vadd.f32 %v2915_v6, %v2451_v63  ;;  %v2452_v61 = vmul.f32 %v2914_v59, %v2444_v1 }
0x1237   : > { %2461 = vst.msk [vmem:[#allocation2] sm:$0xff] %vm1137_vm6, %v2459_v2  ;;  %v2460_v3 = vadd.f32 %v2915_v6, %v2452_v61  ;;  %v2469_v40 = vsel (!%p2916_p1), %vm1137_vm6, %v2459_v2, 0.0 }
0x1238   : > { %2470 = vadd.xlane.f32.xlu0 (!%p2916_p1), %v2469_v40 }
0x1239   : > { %2462 = vst.msk [vmem:[#allocation2 + $0x8] sm:$0xff] %vm1137_vm6, %v2460_v3  ;;  %v2472_v44 = vsel (!%p2916_p1), %vm1137_vm6, %v2460_v3, 0.0 }
0x123c   : > { %2473 = vadd.xlane.f32.xlu0 %v2472_v44 }
0x12c5   : > { %v2471_v4 = vpop.xlane.xlu0 %2470 }
0x12c6   : > { %v2475_v5 = vmul.f32 0.03125, %v2471_v4 }
0x12c8   : > { %v2477_v7 = vsub.f32 %v2459_v2, %v2475_v5 }
0x12c9   : > { %v2474_v8 = vpop.xlane.xlu0 %2473 }
0x12ca   : > { %v2476_v9 = vmul.f32 0.03125, %v2474_v8  ;;  %v2479_v10 = vmul.f32 %v2477_v7, %v2477_v7 }
0x12cc   : > { %v2478_v11 = vsub.f32 %v2460_v3, %v2476_v9  ;;  %v2481_v12 = vsel %vm1137_vm6, %v2479_v10, 0.0 }
0x12cd   : > { %2482 = vadd.xlane.f32.xlu1 %v2481_v12 }
0x12ce   : > { %v2480_v13 = vmul.f32 %v2478_v11, %v2478_v11 }
0x12d0   : > { %v2484_v14 = vsel %vm1137_vm6, %v2480_v13, 0.0 }
0x12d1   : > { %2485 = vadd.xlane.f32.xlu1 %v2484_v14 }
0x135a   : > { %v2483_v17 = vpop.xlane.xlu1 %2482 }
0x135b   : > { %v2487_v18 = vmul.f32 0.03125, %v2483_v17 }
0x135d   : > { %v2489_v19 = vadd.f32 1e-05, %v2487_v18 }
0x135e   : > { %v2486_v20 = vpop.xlane.xlu1 %2485 }
0x135f   : > { %3309 = vrsqrt.f32 %v2489_v19  ;;  %v2488_v21 = vmul.f32 0.03125, %v2486_v20 }
0x1361   : > { %v2490_v22 = vadd.f32 1e-05, %v2488_v21 }
0x1363   : > { %3311 = vrsqrt.f32 %v2490_v22 }
0x1369   : > { %v3310_v23 = vpop.eup %3309 }
0x136a   : > { %v2493_v24 = vmul.f32 %v3310_v23, %v2477_v7 }
0x136c   : > { %v2501_v28 = vmul.f32 %v2917_v25, %v2493_v24 }
0x136d   : > { %v3312_v26 = vpop.eup %3311 }
0x136e   : > { %v2494_v27 = vmul.f32 %v3312_v26, %v2478_v11  ;;  %v2509_v30 = vadd.f32 %v2918_v51, %v2501_v28 }
0x1370   : > { %v2502_v29 = vmul.f32 %v2917_v25, %v2494_v27 }
0x1372   : > { %v2510_v31 = vadd.f32 %v2918_v51, %v2502_v29 }
0x1374   : > { %v2511_v32 = vpack.c.bf16 %v2510_v31, %v2509_v30 }
0x1376   : > { %3145 = vmatmul.mubr.msk.bf16.vlgmr.msra.gmra.mrb[0].mxu0 %vm1137_vm6, %v2511_v32 }
0x1449   : > { %v2572_v36 = vpop.f32.mrb[0].mxu0 }
0x144a   : > { %v2573_v37 = vadd.f32 %v2919_v35, %v2572_v36  ;;  %v3146_v38 = vpop.f32.mrb[1].mxu0 }
0x144b   : > { %v2575_v39 = vpop.f32.mrb[2].mxu0 }
0x144c   : > { %v2576_v41 = vadd.f32 %v2919_v35, %v2575_v39  ;;  %v3147_v42 = vpop.f32.mrb[3].mxu0  ;;  %v2579_v43 = vmax.f32 %v2573_v37, 0.0 }
0x144e   : > { %v2580_v45 = vmax.f32 %v2576_v41, 0.0 }
0x1450   : > { %v2581_v46 = vpack.c.bf16 %v2580_v45, %v2579_v43 }
0x1452   : > { %3153 = vmatmul.mubr.msk.bf16.vlgmr.msra.gmra.mrb[0].mxu1 %vm1137_vm6, %v2581_v46 }
0x1525   : > { %v2642_v48 = vpop.f32.mrb[0].mxu1 }
0x1526   : > { %v2643_v49 = vadd.f32 %v2923_v47, %v2642_v48  ;;  %v3154_v50 = vpop.f32.mrb[1].mxu1 }
0x1527   : > { %v2645_v52 = vpop.f32.mrb[2].mxu1 }
0x1528   : > { %3313 = vtanh.f32 %v2643_v49  ;;  %v2646_v55 = vadd.f32 %v2923_v47, %v2645_v52  ;;  %v3155_v56 = vpop.f32.mrb[3].mxu1 }
0x152a   : > { %3315 = vtanh.f32 %v2646_v55 }
0x1532   : > { %v3314_v53 = vpop.eup %3313 }
0x1533   : > { %2651 = vst [vmem:[%s3692_s30] sm:$0xff] %v3314_v53 }
0x1534   : > { %v3316_v57 = vpop.eup %3315 }
0x1535   : > { %2652 = vst [vmem:[%s3692_s30 + $0x8] sm:$0xff] %v3316_v57 }
0x1536 PF: > { %s4155_s8 = sld [smem:[#allocation12_spill]]  ;;  %s4156_s1 = sld [smem:[#allocation9_spill]] }
0x1537   : > { %s4158_s6 = sld [smem:[#allocation36_spill]]  ;;  %s2667_s7 = sshll.u32 %s3692_s30, 4  ;;  %s4001_s7 = int_to_ptr.vmem [resolvable:$true] %s2667_s7 }
0x1538   : > { %s3317_s23 = scalar_lea.vmem %s4001_s7, 256  ;;  %s3436_s29 = smov [#allocation5]  }
0x1539   : > { %p3318_p2 = scmp.ne.s32.totalorder %s4001_s7, %s3317_s23  ;;  %s3321_s13 = sshll.u32 %s3436_s29, 4  ;;  %s3322_s13 = int_to_ptr.vmem [resolvable:$false] %s3321_s13 }
0x153a   : > { %s3323_s5 = scalar_lea.vmem %s3322_s13, 512  ;;  %p3324_p6 = scmp.lt.s32.totalorder %s4001_s7, %s3322_s13 }
0x153b   : > { %p3319_p4 = pnand %p3318_p2, %p3607_p3  ;;  %p3325_p7 = scmp.lt.s32.totalorder %s3323_s5, %s3317_s23 }
0x153c   : > { %s2936_s25 = sshll.u32 %s4155_s8, 8  ;;  %s4159_s2 = sand.u32 1, %s4156_s1  }
0x153d   : > { %s3998_s24 = scalar_lea.hbm %s4158_s6, %s2936_s25  ;;  %s4005_s12 = scalar_lea.sflag [#allocation6], %s4159_s2 }
0x153e   : > { %p3320_p5 = pneg %p3319_p4  ;;  %p3326_p8 = por %p3325_p7, %p3324_p6 }
0x1540   : > { %p3327_p10 = pnand %p3326_p8, %p3320_p5 }
0x1542   : > { %3330 = shalt.err (!%p3327_p10)
}
0x1543   : > { %s3331_s30 = scalar_lea.hbm %s3998_s24, 256  ;;  %s3335_s9 = scalar_lea.hbm %s4158_s6, 512 }
0x1544   : > { %p3332_p11 = scmp.ne.s32.totalorder %s3998_s24, %s3331_s30  ;;  %p3336_p0 = scmp.lt.u32.totalorder %s3998_s24, %s4158_s6 }
0x1545   : > { %p3337_p1 = scmp.lt.u32.totalorder %s3335_s9, %s3331_s30  ;;  %p3339_p4 = scmp.lt.u32.totalorder %s3331_s30, %s3998_s24 }
0x1546   : > { %p3333_p12 = pnand %p3332_p11, %p3607_p3 }
0x1547   : > { %p3338_p2 = por %p3337_p1, %p3336_p0 }
0x1548   : > { %p3334_p13 = pneg %p3333_p12 }
0x1549   : > { %p3340_p5 = por %p3339_p4, %p3338_p2 }
0x154b   : > { %p3341_p6 = pnand %p3340_p5, %p3334_p13 }
0x154d   : > { %3344 = shalt.err (!%p3341_p6)
}
0x154e   : > { %s3437_s25 = smov 128  }
0x154f   : > { %3156 = dma.vmem_to_hbm [thread:$0]  (%p3607_p3), %s4001_s7, 256, %s3998_s24, %s4005_s12, %s3437_s25, %s3437_s25, %s3431_s26  }
0x1550 PF: > { %s4160_s11 = sld [smem:[#allocation15_spill]]  ;;  %s4161_s28 = sld [smem:[#allocation8_spill]] }
0x1556   : > { %p3162_p7 = scmp.ge.s32.totalorder %s4160_s11, 2  ;;  %s2682_s23 = sand.u32 1, %s4161_s28  }
0x1557   : > { %s2683_s29 = scalar_lea.sflag [#allocation6], %s2682_s23 }
0x1558   : > { %p3159_p8 = pnand %p3162_p7, %p3617_p9 }
0x155a   : > { %3378 = dma.done.wait (!%p3159_p8), %s2683_s29, 256  }
0x155b   : > { %3380 = vsyncadd (!%p3159_p8), %s2683_s29, 4294967040  ;;  %s36_s2 = sadd.s32 1, %s4160_s11   ;;  %s4163_s4 = sld [smem:[#allocation9_spill]] }
0x155c   : > { %p33_p10 = scmp.ge.s32.totalorder %s36_s2, 6   ;;  %s4164_s30 = sld [smem:[#allocation10_spill]] }
0x155d   : > { %s4165_s24 = sld [smem:[#allocation20_spill]]  ;;  %s4166_s25 = sld [smem:[#allocation13_spill]] }
0x155e   : > { %s4167_s5 = sld [smem:[#allocation14_spill]]  ;;  %s4168_s1 = sld [smem:[#allocation16_spill]] }
0x155f   : > { %s4169_s26 = sld [smem:[#allocation18_spill]]  ;;  %35 = sbr.rel (!%p33_p10) target bundleno = 21 (0x15), region = 191 }
0x1566   :  { %2688 = vsyncpa [#allocation6], 1 }
0x1567   :  { %2690 = vsyncpa [#allocation6 + $0x1], 1 }

</bundles_post_ra>
